<compile_context>
chip_gen: v5e
topology: v5e:2x2
jax: 0.10.0
libtpu: 0.0.40
codegen_flags: <defaults>
</compile_context>

<pallas_src>
import functools

import jax
import jax.numpy as jnp
from jax.experimental import pallas as pl
from jax.experimental.pallas import tpu as pltpu


class Config:
    image_size = 16
    patch_size = 8
    hidden_size = 32
    num_heads = 4
    intermediate_size = 64
    num_layers = 3
    num_channels = 3
    eps = 1e-5


def _round_up(x, m):
    return (x + m - 1) // m * m


def padded_dims(cfg):
    D, H = cfg.hidden_size, cfg.num_heads
    S = (cfg.image_size // cfg.patch_size) ** 2 + 1
    dims = dict(
        D=D, H=H, Dh=D // H, I=cfg.intermediate_size, S=S,
        S_pad=_round_up(S, 8),
        D_pad=_round_up(D, 128),
        I_pad=_round_up(cfg.intermediate_size, 128),
        CPP=cfg.num_channels * cfg.patch_size ** 2,
    )
    dims["Dh_pad"] = dims["D_pad"] // H
    assert dims["Dh_pad"] * H == dims["D_pad"] and dims["Dh_pad"] >= dims["Dh"]
    return dims


# ----------------------------------------------------------------------------
# Kernel: one grid step = (one image, one encoder layer).
# Embeddings + pre-LN are computed at layer==0; hidden state lives in out_ref.
# ----------------------------------------------------------------------------
def _clip_layer_kernel(
    xp_ref, pw_ref, tok_ref, preg_ref, preb_ref,
    ln1g_ref, ln1b_ref, qkvw_ref, qkvb_ref, ow_ref, ob_ref,
    ln2g_ref, ln2b_ref, fc1w_ref, fc1b_ref, fc2w_ref, fc2b_ref,
    out_ref,
    *, num_heads, head_dim, head_dim_pad, d_real, s_real, eps, run_layers):
    f32, bf16 = jnp.float32, jnp.bfloat16
    S_pad, D_pad = out_ref.shape
    layer = pl.program_id(1)

    # lane mask over the real hidden dim (pad lanes stay exactly zero everywhere)
    lane_id = jax.lax.broadcasted_iota(jnp.int32, (S_pad, D_pad), 1)
    feat_mask = lane_id < d_real
    inv_d = 1.0 / d_real

    def layer_norm(x, g, b):
        mu = jnp.sum(x, axis=-1, keepdims=True) * inv_d          # pads are 0 -> exact
        xc = jnp.where(feat_mask, x - mu, 0.0)
        var = jnp.sum(xc * xc, axis=-1, keepdims=True) * inv_d
        return xc * jax.lax.rsqrt(var + eps) * g + b              # pad lanes -> b (=0)

    # ---------------- embeddings + pre_layrnorm (only at layer 0) ----------------
    @pl.when(layer == 0)
    def _embed():
        emb = jnp.dot(xp_ref[...], pw_ref[...],
                      preferred_element_type=f32) + tok_ref[...]
        out_ref[...] = layer_norm(emb, preg_ref[...], preb_ref[...])

    if not run_layers:            # select_layer points at the embeddings themselves
        return

    h = out_ref[...]                                               # (S_pad, D_pad) f32

    # ---------------- self-attention block ----------------
    hn = layer_norm(h, ln1g_ref[...], ln1b_ref[...])
    qkv = (jnp.dot(hn.astype(bf16), qkvw_ref[...],
                   preferred_element_type=f32) + qkvb_ref[...])    # (S_pad, 3*D_pad)

    def to_heads(x2d):            # (S_pad, D_pad) -> (H, S_pad, Dh_pad), bf16 MXU operand
        return jnp.stack(
            [x2d[:, i * head_dim_pad:(i + 1) * head_dim_pad] for i in range(num_heads)],
            axis=0).astype(bf16)

    q = to_heads(qkv[:, 0 * D_pad:1 * D_pad])
    k = to_heads(qkv[:, 1 * D_pad:2 * D_pad])
    v = to_heads(qkv[:, 2 * D_pad:3 * D_pad])

    s = jnp.einsum('hqd,hkd->hqk', q, k, preferred_element_type=f32)
    s = s * (head_dim ** -0.5)
    # mask padded key tokens (in-kernel iota, replaces the old dense HBM mask)
    kidx = jax.lax.broadcasted_iota(jnp.int32, (1, 1, S_pad), 2)
    s = s + jnp.where(kidx < s_real, 0.0, -1e9).astype(f32)
    s = s - jnp.max(s, axis=-1, keepdims=True)
    p = jnp.exp(s)
    # approx reciprocal = EUP slot; tiny rel. error vs exact division (acceptable here)
    p = p * pl.reciprocal(jnp.sum(p, axis=-1, keepdims=True), approx=True)
    o = jnp.einsum('hqk,hkd->hqd', p.astype(bf16), v,
                   preferred_element_type=f32)                     # (H, S_pad, Dh_pad)
    o2d = jnp.concatenate([o[i] for i in range(num_heads)], axis=-1)  # (S_pad, D_pad)

    # single full-width output projection (K = D, not K = head_dim)
    attn = (jnp.dot(o2d.astype(bf16), ow_ref[...],
                    preferred_element_type=f32) + ob_ref[...])
    h = h + attn

    # ---------------- MLP block: fc1 -> QuickGELU -> fc2 ----------------
    hn = layer_norm(h, ln2g_ref[...], ln2b_ref[...])
    m = (jnp.dot(hn.astype(bf16), fc1w_ref[...],
                 preferred_element_type=f32) + fc1b_ref[...])
    m = m * jax.nn.sigmoid(1.702 * m)                              # QuickGELU, f32
    m = (jnp.dot(m.astype(bf16), fc2w_ref[...],
                 preferred_element_type=f32) + fc2b_ref[...])
    out_ref[...] = h + m


# ----------------------------------------------------------------------------
# Parameter init (synthetic, deterministic) and packing (padding + bf16 + stacking).
# ----------------------------------------------------------------------------
def init_params(key, cfg):
    D, I, C, P = cfg.hidden_size, cfg.intermediate_size, cfg.num_channels, cfg.patch_size
    n_pos = (cfg.image_size // cfg.patch_size) ** 2 + 1
    keys = iter(jax.random.split(key, 64))

    def nrm(shape):
        return (0.02 * jax.random.normal(next(keys), shape)).astype(jnp.float32)

    params = {
        "patch_w": nrm((C * P * P, D)),      # flattened conv kernel, (C,P,P)-major rows
        "cls": nrm((D,)),
        "pos": nrm((n_pos, D)),
        "pre_ln_g": jnp.ones((D,), jnp.float32),
        "pre_ln_b": jnp.zeros((D,), jnp.float32),
        "layers": [],
    }
    for _ in range(cfg.num_layers):
        params["layers"].append({
            "ln1_g": jnp.ones((D,), jnp.float32), "ln1_b": jnp.zeros((D,), jnp.float32),
            "q_w": nrm((D, D)), "q_b": jnp.zeros((D,), jnp.float32),
            "k_w": nrm((D, D)), "k_b": jnp.zeros((D,), jnp.float32),
            "v_w": nrm((D, D)), "v_b": jnp.zeros((D,), jnp.float32),
            "o_w": nrm((D, D)), "o_b": jnp.zeros((D,), jnp.float32),
            "ln2_g": jnp.ones((D,), jnp.float32), "ln2_b": jnp.zeros((D,), jnp.float32),
            "fc1_w": nrm((D, I)), "fc1_b": jnp.zeros((I,), jnp.float32),
            "fc2_w": nrm((I, D)), "fc2_b": jnp.zeros((D,), jnp.float32),
        })
    return params


def pack_params(params, cfg):
    dims = padded_dims(cfg)
    D, H, Dh, I, S = dims["D"], dims["H"], dims["Dh"], dims["I"], dims["S"]
    Dp, Dhp, Ip, Sp = dims["D_pad"], dims["Dh_pad"], dims["I_pad"], dims["S_pad"]
    L = cfg.num_layers
    f32, bf16 = jnp.float32, jnp.bfloat16

    def pad2(x, r, c):
        return jnp.pad(x, ((0, r - x.shape[0]), (0, c - x.shape[1])))

    def head_pad_cols(w):          # (D,D) -> (Dp,Dp): columns land at h*Dhp .. h*Dhp+Dh
        out = jnp.zeros((Dp, Dp), f32)
        w = w.reshape(D, H, Dh)
        for h in range(H):
            out = out.at[:D, h * Dhp:h * Dhp + Dh].set(w[:, h, :])
        return out

    def head_pad_vec(b):           # (D,) -> (Dp,)
        out = jnp.zeros((Dp,), f32)
        b = b.reshape(H, Dh)
        for h in range(H):
            out = out.at[h * Dhp:h * Dhp + Dh].set(b[h])
        return out

    def head_pad_rows(w):          # (D,D) -> (Dp,Dp): rows land at h*Dhp .. h*Dhp+Dh
        out = jnp.zeros((Dp, Dp), f32)
        w = w.reshape(H, Dh, D)
        for h in range(H):
            out = out.at[h * Dhp:h * Dhp + Dh, :D].set(w[h])
        return out

    ls = params["layers"]
    # additive (class + positional) table: row 0 = cls + pos[0], row i = pos[i]
    tok = params["pos"] + jnp.concatenate(
        [params["cls"].reshape(1, D), jnp.zeros((S - 1, D), f32)], axis=0)

    def stack_ln(name):
        return jnp.stack([pad2(ls[l][name].reshape(1, D), 1, Dp) for l in range(L)], 0)

    packed = {
        "patch_w": pad2(params["patch_w"], dims["CPP"], Dp).astype(bf16),
        "tok": pad2(tok, Sp, Dp).astype(f32),
        "pre_ln_g": pad2(params["pre_ln_g"].reshape(1, D), 1, Dp),
        "pre_ln_b": pad2(params["pre_ln_b"].reshape(1, D), 1, Dp),
        "ln1_g": stack_ln("ln1_g"), "ln1_b": stack_ln("ln1_b"),
        "qkv_w": jnp.stack([
            jnp.concatenate([head_pad_cols(ls[l]["q_w"]),
                             head_pad_cols(ls[l]["k_w"]),
                             head_pad_cols(ls[l]["v_w"])], axis=1)
            for l in range(L)], 0).astype(bf16),                        # (L, Dp, 3Dp)
        "qkv_b": jnp.stack([
            jnp.concatenate([head_pad_vec(ls[l]["q_b"]),
                             head_pad_vec(ls[l]["k_b"]),
                             head_pad_vec(ls[l]["v_b"])]).reshape(1, 3 * Dp)
            for l in range(L)], 0).astype(f32),                         # (L, 1, 3Dp)
        "o_w": jnp.stack([head_pad_rows(ls[l]["o_w"]) for l in range(L)], 0).astype(bf16),
        "o_b": jnp.stack([pad2(ls[l]["o_b"].reshape(1, D), 1, Dp) for l in range(L)], 0),
        "ln2_g": stack_ln("ln2_g"), "ln2_b": stack_ln("ln2_b"),
        "fc1_w": jnp.stack([pad2(ls[l]["fc1_w"], Dp, Ip) for l in range(L)], 0).astype(bf16),
        "fc1_b": jnp.stack([pad2(ls[l]["fc1_b"].reshape(1, I), 1, Ip) for l in range(L)], 0),
        "fc2_w": jnp.stack([pad2(ls[l]["fc2_w"], Ip, Dp) for l in range(L)], 0).astype(bf16),
        "fc2_b": jnp.stack([pad2(ls[l]["fc2_b"].reshape(1, D), 1, Dp) for l in range(L)], 0),
    }
    return packed


# ----------------------------------------------------------------------------
# CLIPVisionTower.forward equivalent.
# ----------------------------------------------------------------------------
def clip_vision_tower_forward(images, packed, cfg,
                              select_layer=-2, select_feature="patch"):
    if isinstance(images, (list, tuple)):          # mirror PyTorch list handling
        return [clip_vision_tower_forward(im[None], packed, cfg,
                                          select_layer, select_feature)
                for im in images]

    in_dtype = images.dtype
    dims = padded_dims(cfg)
    B, C, Himg, Wimg = images.shape
    P, D, H, Dh = cfg.patch_size, cfg.hidden_size, cfg.num_heads, dims["Dh"]
    L = cfg.num_layers
    S, Sp, Dp, CPP = dims["S"], dims["S_pad"], dims["D_pad"], dims["CPP"]
    nH, nW = Himg // P, Wimg // P
    n_patch = nH * nW
    assert n_patch + 1 == S

    # hidden_states[k] == state after k encoder layers; run only what we need.
    idx = select_layer if select_layer >= 0 else L + 1 + select_layer
    assert 0 <= idx <= L, f"select_layer {select_layer} out of range"
    run_layers = idx > 0
    grid_layers = max(idx, 1)

    # ---- layout-only prep in plain JAX (patch extraction -> matmul operand) ----
    x = images.astype(jnp.float32)
    x = x.reshape(B, C, nH, P, nW, P).transpose(0, 2, 4, 1, 3, 5)
    x = x.reshape(B, n_patch, CPP)
    # zero row at the CLS slot + zero rows for padded tokens
    xp = jnp.concatenate([jnp.zeros((B, 1, CPP), jnp.float32), x], axis=1)
    xp = jnp.pad(xp, ((0, 0), (0, Sp - S), (0, 0))).astype(jnp.bfloat16)

    kernel = functools.partial(
        _clip_layer_kernel,
        num_heads=H, head_dim=Dh, head_dim_pad=dims["Dh_pad"],
        d_real=D, s_real=S, eps=cfg.eps, run_layers=run_layers)

    def shared_spec(shape):
        nd = len(shape)
        return pl.BlockSpec(shape, lambda b, l, _n=nd: (0,) * _n)

    def batch_spec(shape):          # (B, ...) -> squeeze batch dim, select image b
        return pl.BlockSpec((None,) + shape[1:], lambda b, l: (b, 0, 0))

    def layer_spec(shape):          # (L, ...) -> squeeze layer dim, stream layer l
        return pl.BlockSpec((None,) + shape[1:], lambda b, l: (l, 0, 0))

    operands = (
        xp, packed["patch_w"], packed["tok"], packed["pre_ln_g"], packed["pre_ln_b"],
        packed["ln1_g"], packed["ln1_b"], packed["qkv_w"], packed["qkv_b"],
        packed["o_w"], packed["o_b"], packed["ln2_g"], packed["ln2_b"],
        packed["fc1_w"], packed["fc1_b"], packed["fc2_w"], packed["fc2_b"])
    in_specs = [
        batch_spec(xp.shape),
        shared_spec(packed["patch_w"].shape),
        shared_spec(packed["tok"].shape),
        shared_spec(packed["pre_ln_g"].shape),
        shared_spec(packed["pre_ln_b"].shape),
        layer_spec(packed["ln1_g"].shape), layer_spec(packed["ln1_b"].shape),
        layer_spec(packed["qkv_w"].shape), layer_spec(packed["qkv_b"].shape),
        layer_spec(packed["o_w"].shape), layer_spec(packed["o_b"].shape),
        layer_spec(packed["ln2_g"].shape), layer_spec(packed["ln2_b"].shape),
        layer_spec(packed["fc1_w"].shape), layer_spec(packed["fc1_b"].shape),
        layer_spec(packed["fc2_w"].shape), layer_spec(packed["fc2_b"].shape),
    ]

    flops_embed = 2 * Sp * CPP * Dp
    flops_layer = (2 * Sp * Dp * 3 * Dp + 4 * H * Sp * Sp * dims["Dh_pad"]
                   + 2 * Sp * Dp * Dp + 4 * Sp * Dp * dims["I_pad"])
    cost = pl.CostEstimate(
        flops=int(B * (flops_embed + grid_layers * flops_layer)),
        transcendentals=int(B * grid_layers * (H * Sp * Sp + Sp * dims["I_pad"])),
        bytes_accessed=int(sum(int(a.nbytes) for a in operands) + B * Sp * Dp * 4))

    hidden = pl.pallas_call(
        kernel,
        out_shape=jax.ShapeDtypeStruct((B, Sp, Dp), jnp.float32),
        grid=(B, grid_layers),
        in_specs=in_specs,
        out_specs=pl.BlockSpec((None, Sp, Dp), lambda b, l: (b, 0, 0)),
        compiler_params=pltpu.CompilerParams(
            dimension_semantics=("parallel", "arbitrary"),
            vmem_limit_bytes=32 * 1024 * 1024),
        cost_estimate=cost,
    )(*operands)

    # ---- feature_select ----
    feats = hidden[:, :S, :D]                       # drop token/lane padding
    if select_feature == "patch":
        feats = feats[:, 1:]
    elif select_feature == "cls_patch":
        pass
    else:
        raise ValueError(f"Unexpected select feature: {select_feature}")
    return feats.astype(in_dtype)


# ----------------------------------------------------------------------------
# main
# ----------------------------------------------------------------------------
if __name__ == "__main__":
    cfg = Config()
    key = jax.random.PRNGKey(0)
    k_img, k_par = jax.random.split(key)

    images = jax.random.normal(
        k_img, (2, cfg.num_channels, cfg.image_size, cfg.image_size),
        dtype=jnp.float32)                          # NCHW, like PyTorch
    params = init_params(k_par, cfg)
    packed = pack_params(params, cfg)

    out = clip_vision_tower_forward(images, packed, cfg,
                                    select_layer=-2, select_feature="patch")
    out = jax.block_until_ready(out)

    n_patches = (cfg.image_size // cfg.patch_size) ** 2
    assert out.shape == (2, n_patches, cfg.hidden_size), out.shape
    assert out.dtype == images.dtype
    assert bool(jnp.all(jnp.isfinite(out)))
    print("KERNEL_OK")
</pallas_src>

<mosaic_0001>
module attributes {stable_mosaic.version = 11 : i64} {
  func.func @_clip_layer_kernel(%arg0: i32, %arg1: i32, %arg2: memref<1x8x192xbf16, #tpu.memory_space<vmem>>, %arg3: memref<192x128xbf16, #tpu.memory_space<vmem>>, %arg4: memref<8x128xf32, #tpu.memory_space<vmem>>, %arg5: memref<1x128xf32, #tpu.memory_space<vmem>>, %arg6: memref<1x128xf32, #tpu.memory_space<vmem>>, %arg7: memref<1x1x128xf32, #tpu.memory_space<vmem>>, %arg8: memref<1x1x128xf32, #tpu.memory_space<vmem>>, %arg9: memref<1x128x384xbf16, #tpu.memory_space<vmem>>, %arg10: memref<1x1x384xf32, #tpu.memory_space<vmem>>, %arg11: memref<1x128x128xbf16, #tpu.memory_space<vmem>>, %arg12: memref<1x1x128xf32, #tpu.memory_space<vmem>>, %arg13: memref<1x1x128xf32, #tpu.memory_space<vmem>>, %arg14: memref<1x1x128xf32, #tpu.memory_space<vmem>>, %arg15: memref<1x128x128xbf16, #tpu.memory_space<vmem>>, %arg16: memref<1x1x128xf32, #tpu.memory_space<vmem>>, %arg17: memref<1x128x128xbf16, #tpu.memory_space<vmem>>, %arg18: memref<1x1x128xf32, #tpu.memory_space<vmem>>, %arg19: memref<1x8x128xf32, #tpu.memory_space<vmem>>) attributes {dimension_semantics = [#tpu.dimension_semantics<parallel>, #tpu.dimension_semantics<arbitrary>], iteration_bounds = array<i64: 2, 2>, scalar_prefetch = 0 : i64, scratch_operands = 0 : i64, tpu.core_type = #tpu.core_type<tc>, window_params = [{transform_indices = @transform_0, window_bounds = array<i64: 1, 8, 192>}, {pipeline_mode = #tpu.pipeline_mode<synchronous>, transform_indices = @transform_1, window_bounds = array<i64: 192, 128>}, {pipeline_mode = #tpu.pipeline_mode<synchronous>, transform_indices = @transform_2, window_bounds = array<i64: 8, 128>}, {pipeline_mode = #tpu.pipeline_mode<synchronous>, transform_indices = @transform_3, window_bounds = array<i64: 1, 128>}, {pipeline_mode = #tpu.pipeline_mode<synchronous>, transform_indices = @transform_4, window_bounds = array<i64: 1, 128>}, {transform_indices = @transform_5, window_bounds = array<i64: 1, 1, 128>}, {transform_indices = @transform_6, window_bounds = array<i64: 1, 1, 128>}, {transform_indices = @transform_7, window_bounds = array<i64: 1, 128, 384>}, {transform_indices = @transform_8, window_bounds = array<i64: 1, 1, 384>}, {transform_indices = @transform_9, window_bounds = array<i64: 1, 128, 128>}, {transform_indices = @transform_10, window_bounds = array<i64: 1, 1, 128>}, {transform_indices = @transform_11, window_bounds = array<i64: 1, 1, 128>}, {transform_indices = @transform_12, window_bounds = array<i64: 1, 1, 128>}, {transform_indices = @transform_13, window_bounds = array<i64: 1, 128, 128>}, {transform_indices = @transform_14, window_bounds = array<i64: 1, 1, 128>}, {transform_indices = @transform_15, window_bounds = array<i64: 1, 128, 128>}, {transform_indices = @transform_16, window_bounds = array<i64: 1, 1, 128>}, {transform_indices = @transform_17, window_bounds = array<i64: 1, 8, 128>}]} {
    %0 = tpu.iota {dimensions = array<i32: 1>} : vector<8x128xi32>
    %c32_i32 = arith.constant 32 : i32
    %1 = vector.broadcast %c32_i32 : i32 to vector<8x128xi32>
    %2 = arith.cmpi slt, %0, %1 : vector<8x128xi32>
    %c0_i32 = arith.constant 0 : i32
    %3 = arith.cmpi eq, %arg1, %c0_i32 : i32
    %4 = arith.extui %3 : i1 to i32
    %c0_i32_0 = arith.constant 0 : i32
    %5 = arith.cmpi ne, %4, %c0_i32_0 : i32
    scf.if %5 {
      %c0_66 = arith.constant 0 : index
      %c0_67 = arith.constant 0 : index
      %c0_68 = arith.constant 0 : index
      %170 = vector.load %arg2[%c0_66, %c0_67, %c0_68] : memref<1x8x192xbf16, #tpu.memory_space<vmem>>, vector<1x8x192xbf16>
      %171 = vector.shape_cast %170 : vector<1x8x192xbf16> to vector<8x192xbf16>
      %c0_69 = arith.constant 0 : index
      %c0_70 = arith.constant 0 : index
      %172 = vector.load %arg3[%c0_69, %c0_70] : memref<192x128xbf16, #tpu.memory_space<vmem>>, vector<192x128xbf16>
      %cst_71 = arith.constant dense<0.000000e+00> : vector<8x128xf32>
      %173 = tpu.matmul %171, %172, %cst_71 {dimension_numbers = #tpu.dot_dimension_numbers<[1], [0], [0], [1], [0, 0, 1, 1], [], []>} : vector<8x192xbf16>, vector<192x128xbf16>, vector<8x128xf32> -> vector<8x128xf32>
      %c0_72 = arith.constant 0 : index
      %c0_73 = arith.constant 0 : index
      %174 = vector.load %arg4[%c0_72, %c0_73] : memref<8x128xf32, #tpu.memory_space<vmem>>, vector<8x128xf32>
      %175 = arith.addf %173, %174 : vector<8x128xf32>
      %c0_74 = arith.constant 0 : index
      %c0_75 = arith.constant 0 : index
      %176 = vector.load %arg5[%c0_74, %c0_75] : memref<1x128xf32, #tpu.memory_space<vmem>>, vector<1x128xf32>
      %c0_76 = arith.constant 0 : index
      %c0_77 = arith.constant 0 : index
      %177 = vector.load %arg6[%c0_76, %c0_77] : memref<1x128xf32, #tpu.memory_space<vmem>>, vector<1x128xf32>
      %cst_78 = arith.constant dense<0.000000e+00> : vector<8xf32>
      %178 = vector.multi_reduction <add>, %175, %cst_78 [1] : vector<8x128xf32> to vector<8xf32>
      %179 = vector.shape_cast %178 : vector<8xf32> to vector<8x1xf32>
      %cst_79 = arith.constant 3.125000e-02 : f32
      %180 = vector.broadcast %cst_79 : f32 to vector<8x1xf32>
      %181 = arith.mulf %179, %180 : vector<8x1xf32>
      %182 = vector.broadcast %181 : vector<8x1xf32> to vector<8x128xf32>
      %183 = arith.subf %175, %182 : vector<8x128xf32>
      %cst_80 = arith.constant 0.000000e+00 : f32
      %184 = vector.broadcast %cst_80 : f32 to vector<8x128xf32>
      %185 = arith.select %2, %183, %184 : vector<8x128xi1>, vector<8x128xf32>
      %186 = arith.mulf %185, %185 : vector<8x128xf32>
      %cst_81 = arith.constant dense<0.000000e+00> : vector<8xf32>
      %187 = vector.multi_reduction <add>, %186, %cst_81 [1] : vector<8x128xf32> to vector<8xf32>
      %188 = vector.shape_cast %187 : vector<8xf32> to vector<8x1xf32>
      %cst_82 = arith.constant 3.125000e-02 : f32
      %189 = vector.broadcast %cst_82 : f32 to vector<8x1xf32>
      %190 = arith.mulf %188, %189 : vector<8x1xf32>
      %cst_83 = arith.constant 9.99999974E-6 : f32
      %191 = vector.broadcast %cst_83 : f32 to vector<8x1xf32>
      %192 = arith.addf %190, %191 : vector<8x1xf32>
      %193 = math.rsqrt %192 : vector<8x1xf32>
      %194 = vector.broadcast %193 : vector<8x1xf32> to vector<8x128xf32>
      %195 = arith.mulf %185, %194 : vector<8x128xf32>
      %196 = vector.broadcast %176 : vector<1x128xf32> to vector<8x128xf32>
      %197 = arith.mulf %195, %196 : vector<8x128xf32>
      %198 = vector.broadcast %177 : vector<1x128xf32> to vector<8x128xf32>
      %199 = arith.addf %197, %198 : vector<8x128xf32>
      %c0_84 = arith.constant 0 : index
      %c0_85 = arith.constant 0 : index
      %c0_86 = arith.constant 0 : index
      %200 = vector.load %arg19[%c0_84, %c0_85, %c0_86] : memref<1x8x128xf32, #tpu.memory_space<vmem>>, vector<1x8x128xf32>
      %201 = vector.shape_cast %200 : vector<1x8x128xf32> to vector<8x128xf32>
      %202 = vector.shape_cast %199 : vector<8x128xf32> to vector<1x8x128xf32>
      tpu.vector_store %arg19[%c0_84, %c0_85, %c0_86], %202 {strides = array<i32>} : memref<1x8x128xf32, #tpu.memory_space<vmem>>, vector<1x8x128xf32>,
    } else {
    }
    %c0 = arith.constant 0 : index
    %c0_1 = arith.constant 0 : index
    %c0_2 = arith.constant 0 : index
    %6 = vector.load %arg19[%c0, %c0_1, %c0_2] : memref<1x8x128xf32, #tpu.memory_space<vmem>>, vector<1x8x128xf32>
    %7 = vector.shape_cast %6 : vector<1x8x128xf32> to vector<8x128xf32>
    %c0_3 = arith.constant 0 : index
    %c0_4 = arith.constant 0 : index
    %c0_5 = arith.constant 0 : index
    %8 = vector.load %arg7[%c0_3, %c0_4, %c0_5] : memref<1x1x128xf32, #tpu.memory_space<vmem>>, vector<1x1x128xf32>
    %9 = vector.shape_cast %8 : vector<1x1x128xf32> to vector<1x128xf32>
    %c0_6 = arith.constant 0 : index
    %c0_7 = arith.constant 0 : index
    %c0_8 = arith.constant 0 : index
    %10 = vector.load %arg8[%c0_6, %c0_7, %c0_8] : memref<1x1x128xf32, #tpu.memory_space<vmem>>, vector<1x1x128xf32>
    %11 = vector.shape_cast %10 : vector<1x1x128xf32> to vector<1x128xf32>
    %cst = arith.constant dense<0.000000e+00> : vector<8xf32>
    %12 = vector.multi_reduction <add>, %7, %cst [1] : vector<8x128xf32> to vector<8xf32>
    %13 = vector.shape_cast %12 : vector<8xf32> to vector<8x1xf32>
    %cst_9 = arith.constant 3.125000e-02 : f32
    %14 = vector.broadcast %cst_9 : f32 to vector<8x1xf32>
    %15 = arith.mulf %13, %14 : vector<8x1xf32>
    %16 = vector.broadcast %15 : vector<8x1xf32> to vector<8x128xf32>
    %17 = arith.subf %7, %16 : vector<8x128xf32>
    %cst_10 = arith.constant 0.000000e+00 : f32
    %18 = vector.broadcast %cst_10 : f32 to vector<8x128xf32>
    %19 = arith.select %2, %17, %18 : vector<8x128xi1>, vector<8x128xf32>
    %20 = arith.mulf %19, %19 : vector<8x128xf32>
    %cst_11 = arith.constant dense<0.000000e+00> : vector<8xf32>
    %21 = vector.multi_reduction <add>, %20, %cst_11 [1] : vector<8x128xf32> to vector<8xf32>
    %22 = vector.shape_cast %21 : vector<8xf32> to vector<8x1xf32>
    %cst_12 = arith.constant 3.125000e-02 : f32
    %23 = vector.broadcast %cst_12 : f32 to vector<8x1xf32>
    %24 = arith.mulf %22, %23 : vector<8x1xf32>
    %cst_13 = arith.constant 9.99999974E-6 : f32
    %25 = vector.broadcast %cst_13 : f32 to vector<8x1xf32>
    %26 = arith.addf %24, %25 : vector<8x1xf32>
    %27 = math.rsqrt %26 : vector<8x1xf32>
    %28 = vector.broadcast %27 : vector<8x1xf32> to vector<8x128xf32>
    %29 = arith.mulf %19, %28 : vector<8x128xf32>
    %30 = vector.broadcast %9 : vector<1x128xf32> to vector<8x128xf32>
    %31 = arith.mulf %29, %30 : vector<8x128xf32>
    %32 = vector.broadcast %11 : vector<1x128xf32> to vector<8x128xf32>
    %33 = arith.addf %31, %32 : vector<8x128xf32>
    %34 = arith.truncf %33 : vector<8x128xf32> to vector<8x128xbf16>
    %c0_14 = arith.constant 0 : index
    %c0_15 = arith.constant 0 : index
    %c0_16 = arith.constant 0 : index
    %35 = vector.load %arg9[%c0_14, %c0_15, %c0_16] : memref<1x128x384xbf16, #tpu.memory_space<vmem>>, vector<1x128x384xbf16>
    %36 = vector.shape_cast %35 : vector<1x128x384xbf16> to vector<128x384xbf16>
    %cst_17 = arith.constant dense<0.000000e+00> : vector<8x384xf32>
    %37 = tpu.matmul %34, %36, %cst_17 {dimension_numbers = #tpu.dot_dimension_numbers<[1], [0], [0], [1], [0, 0, 1, 1], [], []>} : vector<8x128xbf16>, vector<128x384xbf16>, vector<8x384xf32> -> vector<8x384xf32>
    %c0_18 = arith.constant 0 : index
    %c0_19 = arith.constant 0 : index
    %c0_20 = arith.constant 0 : index
    %38 = vector.load %arg10[%c0_18, %c0_19, %c0_20] : memref<1x1x384xf32, #tpu.memory_space<vmem>>, vector<1x1x384xf32>
    %39 = vector.shape_cast %38 : vector<1x1x384xf32> to vector<1x384xf32>
    %40 = vector.broadcast %39 : vector<1x384xf32> to vector<8x384xf32>
    %41 = arith.addf %37, %40 : vector<8x384xf32>
    %42 = vector.extract_strided_slice %41 {offsets = [0, 0], sizes = [8, 128], strides = [1, 1]} : vector<8x384xf32> to vector<8x128xf32>
    %43 = vector.extract_strided_slice %42 {offsets = [0, 0], sizes = [8, 32], strides = [1, 1]} : vector<8x128xf32> to vector<8x32xf32>
    %44 = vector.extract_strided_slice %42 {offsets = [0, 32], sizes = [8, 32], strides = [1, 1]} : vector<8x128xf32> to vector<8x32xf32>
    %45 = vector.extract_strided_slice %42 {offsets = [0, 64], sizes = [8, 32], strides = [1, 1]} : vector<8x128xf32> to vector<8x32xf32>
    %46 = vector.extract_strided_slice %42 {offsets = [0, 96], sizes = [8, 32], strides = [1, 1]} : vector<8x128xf32> to vector<8x32xf32>
    %47 = vector.shape_cast %43 : vector<8x32xf32> to vector<1x8x32xf32>
    %48 = vector.shape_cast %44 : vector<8x32xf32> to vector<1x8x32xf32>
    %49 = vector.shape_cast %45 : vector<8x32xf32> to vector<1x8x32xf32>
    %50 = vector.shape_cast %46 : vector<8x32xf32> to vector<1x8x32xf32>
    %51 = tpu.concatenate %47, %48, %49, %50 in 0 : vector<1x8x32xf32>, vector<1x8x32xf32>, vector<1x8x32xf32>, vector<1x8x32xf32> -> vector<4x8x32xf32>
    %52 = arith.truncf %51 : vector<4x8x32xf32> to vector<4x8x32xbf16>
    %53 = vector.extract_strided_slice %41 {offsets = [0, 128], sizes = [8, 128], strides = [1, 1]} : vector<8x384xf32> to vector<8x128xf32>
    %54 = vector.extract_strided_slice %53 {offsets = [0, 0], sizes = [8, 32], strides = [1, 1]} : vector<8x128xf32> to vector<8x32xf32>
    %55 = vector.extract_strided_slice %53 {offsets = [0, 32], sizes = [8, 32], strides = [1, 1]} : vector<8x128xf32> to vector<8x32xf32>
    %56 = vector.extract_strided_slice %53 {offsets = [0, 64], sizes = [8, 32], strides = [1, 1]} : vector<8x128xf32> to vector<8x32xf32>
    %57 = vector.extract_strided_slice %53 {offsets = [0, 96], sizes = [8, 32], strides = [1, 1]} : vector<8x128xf32> to vector<8x32xf32>
    %58 = vector.shape_cast %54 : vector<8x32xf32> to vector<1x8x32xf32>
    %59 = vector.shape_cast %55 : vector<8x32xf32> to vector<1x8x32xf32>
    %60 = vector.shape_cast %56 : vector<8x32xf32> to vector<1x8x32xf32>
    %61 = vector.shape_cast %57 : vector<8x32xf32> to vector<1x8x32xf32>
    %62 = tpu.concatenate %58, %59, %60, %61 in 0 : vector<1x8x32xf32>, vector<1x8x32xf32>, vector<1x8x32xf32>, vector<1x8x32xf32> -> vector<4x8x32xf32>
    %63 = arith.truncf %62 : vector<4x8x32xf32> to vector<4x8x32xbf16>
    %64 = vector.extract_strided_slice %41 {offsets = [0, 256], sizes = [8, 128], strides = [1, 1]} : vector<8x384xf32> to vector<8x128xf32>
    %65 = vector.extract_strided_slice %64 {offsets = [0, 0], sizes = [8, 32], strides = [1, 1]} : vector<8x128xf32> to vector<8x32xf32>
    %66 = vector.extract_strided_slice %64 {offsets = [0, 32], sizes = [8, 32], strides = [1, 1]} : vector<8x128xf32> to vector<8x32xf32>
    %67 = vector.extract_strided_slice %64 {offsets = [0, 64], sizes = [8, 32], strides = [1, 1]} : vector<8x128xf32> to vector<8x32xf32>
    %68 = vector.extract_strided_slice %64 {offsets = [0, 96], sizes = [8, 32], strides = [1, 1]} : vector<8x128xf32> to vector<8x32xf32>
    %69 = vector.shape_cast %65 : vector<8x32xf32> to vector<1x8x32xf32>
    %70 = vector.shape_cast %66 : vector<8x32xf32> to vector<1x8x32xf32>
    %71 = vector.shape_cast %67 : vector<8x32xf32> to vector<1x8x32xf32>
    %72 = vector.shape_cast %68 : vector<8x32xf32> to vector<1x8x32xf32>
    %73 = tpu.concatenate %69, %70, %71, %72 in 0 : vector<1x8x32xf32>, vector<1x8x32xf32>, vector<1x8x32xf32>, vector<1x8x32xf32> -> vector<4x8x32xf32>
    %74 = arith.truncf %73 : vector<4x8x32xf32> to vector<4x8x32xbf16>
    "tpu.trace_start"() <{level = 10 : i32, message = "hqd,hkd->hqk"}> : () -> ()
    %cst_21 = arith.constant dense<0.000000e+00> : vector<4x8x8xf32>
    %75 = tpu.matmul %52, %63, %cst_21 {dimension_numbers = #tpu.dot_dimension_numbers<[2], [2], [1], [1], [0, 0, 0, 1, 1, 1], [0], [0]>} : vector<4x8x32xbf16>, vector<4x8x32xbf16>, vector<4x8x8xf32> -> vector<4x8x8xf32>
    "tpu.trace_stop"() : () -> ()
    %cst_22 = arith.constant 0.353553385 : f32
    %76 = vector.broadcast %cst_22 : f32 to vector<4x8x8xf32>
    %77 = arith.mulf %75, %76 : vector<4x8x8xf32>
    %78 = tpu.iota {dimensions = array<i32: 2>} : vector<1x1x8xi32>
    %c5_i32 = arith.constant 5 : i32
    %79 = vector.broadcast %c5_i32 : i32 to vector<1x1x8xi32>
    %80 = arith.cmpi slt, %78, %79 : vector<1x1x8xi32>
    %cst_23 = arith.constant 0.000000e+00 : f32
    %cst_24 = arith.constant -1.000000e+09 : f32
    %81 = vector.broadcast %cst_23 : f32 to vector<1x1x8xf32>
    %82 = vector.broadcast %cst_24 : f32 to vector<1x1x8xf32>
    %83 = arith.select %80, %81, %82 : vector<1x1x8xi1>, vector<1x1x8xf32>
    %84 = vector.broadcast %83 : vector<1x1x8xf32> to vector<4x8x8xf32>
    %85 = arith.addf %77, %84 : vector<4x8x8xf32>
    %cst_25 = arith.constant dense<0xFF800000> : vector<4x8xf32>
    %86 = vector.multi_reduction <maximumf>, %85, %cst_25 [2] : vector<4x8x8xf32> to vector<4x8xf32>
    %87 = vector.shape_cast %86 : vector<4x8xf32> to vector<4x8x1xf32>
    %88 = vector.broadcast %87 : vector<4x8x1xf32> to vector<4x8x8xf32>
    %89 = arith.subf %85, %88 : vector<4x8x8xf32>
    %90 = math.exp %89 : vector<4x8x8xf32>
    %cst_26 = arith.constant dense<0.000000e+00> : vector<4x8xf32>
    %91 = vector.multi_reduction <add>, %90, %cst_26 [2] : vector<4x8x8xf32> to vector<4x8xf32>
    %92 = vector.shape_cast %91 : vector<4x8xf32> to vector<4x8x1xf32>
    %93 = tpu.reciprocal %92 {approx = true} : vector<4x8x1xf32> -> vector<4x8x1xf32>
    %94 = vector.broadcast %93 : vector<4x8x1xf32> to vector<4x8x8xf32>
    %95 = arith.mulf %90, %94 : vector<4x8x8xf32>
    %96 = arith.truncf %95 : vector<4x8x8xf32> to vector<4x8x8xbf16>
    "tpu.trace_start"() <{level = 10 : i32, message = "hqk,hkd->hqd"}> : () -> ()
    %cst_27 = arith.constant dense<0.000000e+00> : vector<4x8x32xf32>
    %97 = tpu.matmul %96, %74, %cst_27 {dimension_numbers = #tpu.dot_dimension_numbers<[2], [1], [1], [2], [0, 0, 0, 1, 1, 2], [0], [0]>} : vector<4x8x8xbf16>, vector<4x8x32xbf16>, vector<4x8x32xf32> -> vector<4x8x32xf32>
    "tpu.trace_stop"() : () -> ()
    %98 = vector.extract_strided_slice %97 {offsets = [0, 0, 0], sizes = [1, 8, 32], strides = [1, 1, 1]} : vector<4x8x32xf32> to vector<1x8x32xf32>
    %99 = vector.shape_cast %98 : vector<1x8x32xf32> to vector<8x32xf32>
    %100 = vector.extract_strided_slice %97 {offsets = [1, 0, 0], sizes = [1, 8, 32], strides = [1, 1, 1]} : vector<4x8x32xf32> to vector<1x8x32xf32>
    %101 = vector.shape_cast %100 : vector<1x8x32xf32> to vector<8x32xf32>
    %102 = vector.extract_strided_slice %97 {offsets = [2, 0, 0], sizes = [1, 8, 32], strides = [1, 1, 1]} : vector<4x8x32xf32> to vector<1x8x32xf32>
    %103 = vector.shape_cast %102 : vector<1x8x32xf32> to vector<8x32xf32>
    %104 = vector.extract_strided_slice %97 {offsets = [3, 0, 0], sizes = [1, 8, 32], strides = [1, 1, 1]} : vector<4x8x32xf32> to vector<1x8x32xf32>
    %105 = vector.shape_cast %104 : vector<1x8x32xf32> to vector<8x32xf32>
    %106 = tpu.concatenate %99, %101, %103, %105 in 1 : vector<8x32xf32>, vector<8x32xf32>, vector<8x32xf32>, vector<8x32xf32> -> vector<8x128xf32>
    %107 = arith.truncf %106 : vector<8x128xf32> to vector<8x128xbf16>
    %c0_28 = arith.constant 0 : index
    %c0_29 = arith.constant 0 : index
    %c0_30 = arith.constant 0 : index
    %108 = vector.load %arg11[%c0_28, %c0_29, %c0_30] : memref<1x128x128xbf16, #tpu.memory_space<vmem>>, vector<1x128x128xbf16>
    %109 = vector.shape_cast %108 : vector<1x128x128xbf16> to vector<128x128xbf16>
    %cst_31 = arith.constant dense<0.000000e+00> : vector<8x128xf32>
    %110 = tpu.matmul %107, %109, %cst_31 {dimension_numbers = #tpu.dot_dimension_numbers<[1], [0], [0], [1], [0, 0, 1, 1], [], []>} : vector<8x128xbf16>, vector<128x128xbf16>, vector<8x128xf32> -> vector<8x128xf32>
    %c0_32 = arith.constant 0 : index
    %c0_33 = arith.constant 0 : index
    %c0_34 = arith.constant 0 : index
    %111 = vector.load %arg12[%c0_32, %c0_33, %c0_34] : memref<1x1x128xf32, #tpu.memory_space<vmem>>, vector<1x1x128xf32>
    %112 = vector.shape_cast %111 : vector<1x1x128xf32> to vector<1x128xf32>
    %113 = vector.broadcast %112 : vector<1x128xf32> to vector<8x128xf32>
    %114 = arith.addf %110, %113 : vector<8x128xf32>
    %115 = arith.addf %7, %114 : vector<8x128xf32>
    %c0_35 = arith.constant 0 : index
    %c0_36 = arith.constant 0 : index
    %c0_37 = arith.constant 0 : index
    %116 = vector.load %arg13[%c0_35, %c0_36, %c0_37] : memref<1x1x128xf32, #tpu.memory_space<vmem>>, vector<1x1x128xf32>
    %117 = vector.shape_cast %116 : vector<1x1x128xf32> to vector<1x128xf32>
    %c0_38 = arith.constant 0 : index
    %c0_39 = arith.constant 0 : index
    %c0_40 = arith.constant 0 : index
    %118 = vector.load %arg14[%c0_38, %c0_39, %c0_40] : memref<1x1x128xf32, #tpu.memory_space<vmem>>, vector<1x1x128xf32>
    %119 = vector.shape_cast %118 : vector<1x1x128xf32> to vector<1x128xf32>
    %cst_41 = arith.constant dense<0.000000e+00> : vector<8xf32>
    %120 = vector.multi_reduction <add>, %115, %cst_41 [1] : vector<8x128xf32> to vector<8xf32>
    %121 = vector.shape_cast %120 : vector<8xf32> to vector<8x1xf32>
    %cst_42 = arith.constant 3.125000e-02 : f32
    %122 = vector.broadcast %cst_42 : f32 to vector<8x1xf32>
    %123 = arith.mulf %121, %122 : vector<8x1xf32>
    %124 = vector.broadcast %123 : vector<8x1xf32> to vector<8x128xf32>
    %125 = arith.subf %115, %124 : vector<8x128xf32>
    %cst_43 = arith.constant 0.000000e+00 : f32
    %126 = vector.broadcast %cst_43 : f32 to vector<8x128xf32>
    %127 = arith.select %2, %125, %126 : vector<8x128xi1>, vector<8x128xf32>
    %128 = arith.mulf %127, %127 : vector<8x128xf32>
    %cst_44 = arith.constant dense<0.000000e+00> : vector<8xf32>
    %129 = vector.multi_reduction <add>, %128, %cst_44 [1] : vector<8x128xf32> to vector<8xf32>
    %130 = vector.shape_cast %129 : vector<8xf32> to vector<8x1xf32>
    %cst_45 = arith.constant 3.125000e-02 : f32
    %131 = vector.broadcast %cst_45 : f32 to vector<8x1xf32>
    %132 = arith.mulf %130, %131 : vector<8x1xf32>
    %cst_46 = arith.constant 9.99999974E-6 : f32
    %133 = vector.broadcast %cst_46 : f32 to vector<8x1xf32>
    %134 = arith.addf %132, %133 : vector<8x1xf32>
    %135 = math.rsqrt %134 : vector<8x1xf32>
    %136 = vector.broadcast %135 : vector<8x1xf32> to vector<8x128xf32>
    %137 = arith.mulf %127, %136 : vector<8x128xf32>
    %138 = vector.broadcast %117 : vector<1x128xf32> to vector<8x128xf32>
    %139 = arith.mulf %137, %138 : vector<8x128xf32>
    %140 = vector.broadcast %119 : vector<1x128xf32> to vector<8x128xf32>
    %141 = arith.addf %139, %140 : vector<8x128xf32>
    %142 = arith.truncf %141 : vector<8x128xf32> to vector<8x128xbf16>
    %c0_47 = arith.constant 0 : index
    %c0_48 = arith.constant 0 : index
    %c0_49 = arith.constant 0 : index
    %143 = vector.load %arg15[%c0_47, %c0_48, %c0_49] : memref<1x128x128xbf16, #tpu.memory_space<vmem>>, vector<1x128x128xbf16>
    %144 = vector.shape_cast %143 : vector<1x128x128xbf16> to vector<128x128xbf16>
    %cst_50 = arith.constant dense<0.000000e+00> : vector<8x128xf32>
    %145 = tpu.matmul %142, %144, %cst_50 {dimension_numbers = #tpu.dot_dimension_numbers<[1], [0], [0], [1], [0, 0, 1, 1], [], []>} : vector<8x128xbf16>, vector<128x128xbf16>, vector<8x128xf32> -> vector<8x128xf32>
    %c0_51 = arith.constant 0 : index
    %c0_52 = arith.constant 0 : index
    %c0_53 = arith.constant 0 : index
    %146 = vector.load %arg16[%c0_51, %c0_52, %c0_53] : memref<1x1x128xf32, #tpu.memory_space<vmem>>, vector<1x1x128xf32>
    %147 = vector.shape_cast %146 : vector<1x1x128xf32> to vector<1x128xf32>
    %148 = vector.broadcast %147 : vector<1x128xf32> to vector<8x128xf32>
    %149 = arith.addf %145, %148 : vector<8x128xf32>
    %cst_54 = arith.constant 1.702000e+00 : f32
    %150 = vector.broadcast %cst_54 : f32 to vector<8x128xf32>
    %151 = arith.mulf %150, %149 : vector<8x128xf32>
    %152 = arith.negf %151 : vector<8x128xf32>
    %153 = math.exp %152 : vector<8x128xf32>
    %cst_55 = arith.constant 1.000000e+00 : f32
    %154 = vector.broadcast %cst_55 : f32 to vector<8x128xf32>
    %155 = arith.addf %154, %153 : vector<8x128xf32>
    %156 = arith.divf %154, %155 : vector<8x128xf32>
    %157 = arith.mulf %149, %156 : vector<8x128xf32>
    %158 = arith.truncf %157 : vector<8x128xf32> to vector<8x128xbf16>
    %c0_56 = arith.constant 0 : index
    %c0_57 = arith.constant 0 : index
    %c0_58 = arith.constant 0 : index
    %159 = vector.load %arg17[%c0_56, %c0_57, %c0_58] : memref<1x128x128xbf16, #tpu.memory_space<vmem>>, vector<1x128x128xbf16>
    %160 = vector.shape_cast %159 : vector<1x128x128xbf16> to vector<128x128xbf16>
    %cst_59 = arith.constant dense<0.000000e+00> : vector<8x128xf32>
    %161 = tpu.matmul %158, %160, %cst_59 {dimension_numbers = #tpu.dot_dimension_numbers<[1], [0], [0], [1], [0, 0, 1, 1], [], []>} : vector<8x128xbf16>, vector<128x128xbf16>, vector<8x128xf32> -> vector<8x128xf32>
    %c0_60 = arith.constant 0 : index
    %c0_61 = arith.constant 0 : index
    %c0_62 = arith.constant 0 : index
    %162 = vector.load %arg18[%c0_60, %c0_61, %c0_62] : memref<1x1x128xf32, #tpu.memory_space<vmem>>, vector<1x1x128xf32>
    %163 = vector.shape_cast %162 : vector<1x1x128xf32> to vector<1x128xf32>
    %164 = vector.broadcast %163 : vector<1x128xf32> to vector<8x128xf32>
    %165 = arith.addf %161, %164 : vector<8x128xf32>
    %166 = arith.addf %115, %165 : vector<8x128xf32>
    %c0_63 = arith.constant 0 : index
    %c0_64 = arith.constant 0 : index
    %c0_65 = arith.constant 0 : index
    %167 = vector.load %arg19[%c0_63, %c0_64, %c0_65] : memref<1x8x128xf32, #tpu.memory_space<vmem>>, vector<1x8x128xf32>
    %168 = vector.shape_cast %167 : vector<1x8x128xf32> to vector<8x128xf32>
    %169 = vector.shape_cast %166 : vector<8x128xf32> to vector<1x8x128xf32>
    tpu.vector_store %arg19[%c0_63, %c0_64, %c0_65], %169 {strides = array<i32>} : memref<1x8x128xf32, #tpu.memory_space<vmem>>, vector<1x8x128xf32>,
    return
  }
  func.func @transform_0(%arg0: i32, %arg1: i32) -> (i32, i32, i32) {
    %c0_i32 = arith.constant 0 : i32
    %c0_i32_0 = arith.constant 0 : i32
    %c0_i32_1 = arith.constant 0 : i32
    return %arg0, %c0_i32, %c0_i32_0 : i32, i32, i32
  }
  func.func @transform_1(%arg0: i32, %arg1: i32) -> (i32, i32) {
    %c0_i32 = arith.constant 0 : i32
    %c0_i32_0 = arith.constant 0 : i32
    %c0_i32_1 = arith.constant 0 : i32
    return %c0_i32, %c0_i32_0 : i32, i32
  }
  func.func @transform_2(%arg0: i32, %arg1: i32) -> (i32, i32) {
    %c0_i32 = arith.constant 0 : i32
    %c0_i32_0 = arith.constant 0 : i32
    %c0_i32_1 = arith.constant 0 : i32
    return %c0_i32, %c0_i32_0 : i32, i32
  }
  func.func @transform_3(%arg0: i32, %arg1: i32) -> (i32, i32) {
    %c0_i32 = arith.constant 0 : i32
    %c0_i32_0 = arith.constant 0 : i32
    %c0_i32_1 = arith.constant 0 : i32
    return %c0_i32, %c0_i32_0 : i32, i32
  }
  func.func @transform_4(%arg0: i32, %arg1: i32) -> (i32, i32) {
    %c0_i32 = arith.constant 0 : i32
    %c0_i32_0 = arith.constant 0 : i32
    %c0_i32_1 = arith.constant 0 : i32
    return %c0_i32, %c0_i32_0 : i32, i32
  }
  func.func @transform_5(%arg0: i32, %arg1: i32) -> (i32, i32, i32) {
    %c0_i32 = arith.constant 0 : i32
    %c0_i32_0 = arith.constant 0 : i32
    %c0_i32_1 = arith.constant 0 : i32
    return %arg1, %c0_i32, %c0_i32_0 : i32, i32, i32
  }
  func.func @transform_6(%arg0: i32, %arg1: i32) -> (i32, i32, i32) {
    %c0_i32 = arith.constant 0 : i32
    %c0_i32_0 = arith.constant 0 : i32
    %c0_i32_1 = arith.constant 0 : i32
    return %arg1, %c0_i32, %c0_i32_0 : i32, i32, i32
  }
  func.func @transform_7(%arg0: i32, %arg1: i32) -> (i32, i32, i32) {
    %c0_i32 = arith.constant 0 : i32
    %c0_i32_0 = arith.constant 0 : i32
    %c0_i32_1 = arith.constant 0 : i32
    return %arg1, %c0_i32, %c0_i32_0 : i32, i32, i32
  }
  func.func @transform_8(%arg0: i32, %arg1: i32) -> (i32, i32, i32) {
    %c0_i32 = arith.constant 0 : i32
    %c0_i32_0 = arith.constant 0 : i32
    %c0_i32_1 = arith.constant 0 : i32
    return %arg1, %c0_i32, %c0_i32_0 : i32, i32, i32
  }
  func.func @transform_9(%arg0: i32, %arg1: i32) -> (i32, i32, i32) {
    %c0_i32 = arith.constant 0 : i32
    %c0_i32_0 = arith.constant 0 : i32
    %c0_i32_1 = arith.constant 0 : i32
    return %arg1, %c0_i32, %c0_i32_0 : i32, i32, i32
  }
  func.func @transform_10(%arg0: i32, %arg1: i32) -> (i32, i32, i32) {
    %c0_i32 = arith.constant 0 : i32
    %c0_i32_0 = arith.constant 0 : i32
    %c0_i32_1 = arith.constant 0 : i32
    return %arg1, %c0_i32, %c0_i32_0 : i32, i32, i32
  }
  func.func @transform_11(%arg0: i32, %arg1: i32) -> (i32, i32, i32) {
    %c0_i32 = arith.constant 0 : i32
    %c0_i32_0 = arith.constant 0 : i32
    %c0_i32_1 = arith.constant 0 : i32
    return %arg1, %c0_i32, %c0_i32_0 : i32, i32, i32
  }
  func.func @transform_12(%arg0: i32, %arg1: i32) -> (i32, i32, i32) {
    %c0_i32 = arith.constant 0 : i32
    %c0_i32_0 = arith.constant 0 : i32
    %c0_i32_1 = arith.constant 0 : i32
    return %arg1, %c0_i32, %c0_i32_0 : i32, i32, i32
  }
  func.func @transform_13(%arg0: i32, %arg1: i32) -> (i32, i32, i32) {
    %c0_i32 = arith.constant 0 : i32
    %c0_i32_0 = arith.constant 0 : i32
    %c0_i32_1 = arith.constant 0 : i32
    return %arg1, %c0_i32, %c0_i32_0 : i32, i32, i32
  }
  func.func @transform_14(%arg0: i32, %arg1: i32) -> (i32, i32, i32) {
    %c0_i32 = arith.constant 0 : i32
    %c0_i32_0 = arith.constant 0 : i32
    %c0_i32_1 = arith.constant 0 : i32
    return %arg1, %c0_i32, %c0_i32_0 : i32, i32, i32
  }
  func.func @transform_15(%arg0: i32, %arg1: i32) -> (i32, i32, i32) {
    %c0_i32 = arith.constant 0 : i32
    %c0_i32_0 = arith.constant 0 : i32
    %c0_i32_1 = arith.constant 0 : i32
    return %arg1, %c0_i32, %c0_i32_0 : i32, i32, i32
  }
  func.func @transform_16(%arg0: i32, %arg1: i32) -> (i32, i32, i32) {
    %c0_i32 = arith.constant 0 : i32
    %c0_i32_0 = arith.constant 0 : i32
    %c0_i32_1 = arith.constant 0 : i32
    return %arg1, %c0_i32, %c0_i32_0 : i32, i32, i32
  }
  func.func @transform_17(%arg0: i32, %arg1: i32) -> (i32, i32, i32) {
    %c0_i32 = arith.constant 0 : i32
    %c0_i32_0 = arith.constant 0 : i32
    %c0_i32_1 = arith.constant 0 : i32
    return %arg0, %c0_i32, %c0_i32_0 : i32, i32, i32
  }
}

</mosaic_0001>

<bundles_post_ra>
// kernel: tpu_custom_call.1
= control target key start
LH: loop header
LB: loop body
LE: loop exit
PB: predicated region body
PF: predicated region fallthrough
CT: control target
= control target key end

     0   :  { %s4048_s0 = inlined_call_operand.hbm [shape: bf16[2,8,192], index: 0, kind: input, shape index: {}]   ;;  %s4049_s1 = inlined_call_operand.hbm [shape: bf16[192,128], index: 1, kind: input, shape index: {}]   ;;  %s4050_s2 = inlined_call_operand.hbm [shape: f32[8,128], index: 2, kind: input, shape index: {}]   ;;  %s4051_s3 = inlined_call_operand.hbm [shape: f32[1,128], index: 3, kind: input, shape index: {}]   ;;  %s4052_s4 = inlined_call_operand.hbm [shape: f32[1,128], index: 4, kind: input, shape index: {}]   ;;  %s4053_s5 = inlined_call_operand.vmem [shape: f32[3,1,128], index: 5, kind: input, shape index: {}]   ;;  %s4054_s6 = inlined_call_operand.hbm [shape: f32[3,1,128], index: 6, kind: input, shape index: {}]   ;;  %s4055_s7 = inlined_call_operand.hbm [shape: bf16[3,128,384], index: 7, kind: input, shape index: {}]   ;;  %s4056_s8 = inlined_call_operand.hbm [shape: f32[3,1,384], index: 8, kind: input, shape index: {}]   ;;  %s4057_s9 = inlined_call_operand.hbm [shape: bf16[3,128,128], index: 9, kind: input, shape index: {}]   ;;  %s4058_s10 = inlined_call_operand.vmem [shape: f32[3,1,128], index: 10, kind: input, shape index: {}]   ;;  %s4059_s11 = inlined_call_operand.vmem [shape: f32[3,1,128], index: 11, kind: input, shape index: {}]   ;;  %s4060_s12 = inlined_call_operand.hbm [shape: f32[3,1,128], index: 12, kind: input, shape index: {}]   ;;  %s4061_s13 = inlined_call_operand.hbm [shape: bf16[3,128,128], index: 13, kind: input, shape index: {}]   ;;  %s4062_s14 = inlined_call_operand.vmem [shape: f32[3,1,128], index: 14, kind: input, shape index: {}]   ;;  %s4063_s15 = inlined_call_operand.hbm [shape: bf16[3,128,128], index: 15, kind: input, shape index: {}]   ;;  %s4064_s16 = inlined_call_operand.vmem [shape: f32[3,1,128], index: 16, kind: input, shape index: {}]   ;;  %s4065_s17 = inlined_call_operand.hbm [shape: f32[2,8,128], index: 17, kind: output, shape index: {}]  }
   0x1   :  { %4092 = sst [smem:[#allocation48_spill]] %s4048_s0 }
   0x2   :  { %4093 = sst [smem:[#allocation49_spill]] %s4049_s1 }
   0x3   :  { %4094 = sst [smem:[#allocation50_spill]] %s4050_s2 }
   0x4   :  { %4095 = sst [smem:[#allocation51_spill]] %s4051_s3 }
   0x5   :  { %4096 = sst [smem:[#allocation52_spill]] %s4052_s4 }
   0x6   :  { %4097 = sst [smem:[#allocation53_spill]] %s4053_s5 }
   0x7   :  { %4098 = sst [smem:[#allocation54_spill]] %s4054_s6 }
   0x8   :  { %4099 = sst [smem:[#allocation55_spill]] %s4055_s7 }
   0x9   :  { %4100 = sst [smem:[#allocation56_spill]] %s4056_s8 }
   0xa   :  { %4101 = sst [smem:[#allocation57_spill]] %s4057_s9 }
   0xb   :  { %4102 = sst [smem:[#allocation58_spill]] %s4058_s10 }
   0xc   :  { %4103 = sst [smem:[#allocation59_spill]] %s4059_s11 }
   0xd   :  { %4104 = sst [smem:[#allocation60_spill]] %s4060_s12 }
   0xe   :  { %4105 = sst [smem:[#allocation61_spill]] %s4061_s13 }
   0xf   :  { %4106 = sst [smem:[#allocation62_spill]] %s4062_s14 }
  0x10   :  { %4107 = sst [smem:[#allocation63_spill]] %s4063_s15 }
  0x11   :  { %4108 = sst [smem:[#allocation64_spill]] %s4064_s16 }
  0x12   :  { %4109 = sst [smem:[#allocation65_spill]] %s4065_s17 }
  0x13   :  { %22 = vsyncpa [#allocation3], 0 }
  0x14   :  { %24 = vsyncpa [#allocation3 + $0x1], 0 }
  0x15   :  { %25 = vsyncpa [#allocation6], 0 }
  0x16   :  { %26 = vsyncpa [#allocation9], 0 }
  0x17   :  { %27 = vsyncpa [#allocation12], 0 }
  0x18   :  { %29 = vsyncpa [#allocation12 + $0x1], 0 }
  0x19   :  { %30 = vsyncpa [#allocation15], 0 }
  0x1a   :  { %32 = vsyncpa [#allocation15 + $0x1], 0 }
  0x1b   :  { %33 = vsyncpa [#allocation18], 0 }
  0x1c   :  { %35 = vsyncpa [#allocation18 + $0x1], 0 }
  0x1d   :  { %36 = vsyncpa [#allocation21], 0 }
  0x1e   :  { %38 = vsyncpa [#allocation21 + $0x1], 0 }
  0x1f   :  { %39 = vsyncpa [#allocation4], 0 }
  0x20   :  { %41 = vsyncpa [#allocation4 + $0x1], 0  ;;  %s3475_s24 = smov 0   ;;  %s3477_s25 = smov 0  }
  0x21   :  { %s3479_s26 = smov 0   ;;  %s3481_s27 = smov 0  }
  0x22   :  { %s3483_s28 = smov 0   ;;  %s3485_s29 = smov 0  }
  0x23   :  { %s3487_s0 = smov 0   ;;  %s3489_s30 = smov 0  }
  0x24   :  { %s3491_s18 = smov 0   ;;  %s3493_s19 = smov 0  }
  0x25   :  { %s3495_s1 = smov 0  }
  0x26 LB: > { %4110 = sst [smem:[#allocation31_spill]] %s3335_s25  ;;  %s3529_s20 = sadd.s32 4294967295, %s3371_s1   ;;  %s3371_s1 = sphi %s3495_s1, %s47_s1   ;;  %s3367_s19 = sphi %s3493_s19, %s4188_s19   ;;  %s3363_s18 = sphi %s3491_s18, %s4187_s18   ;;  %s3359_s30 = sphi %s3489_s30, %s4186_s30   ;;  %s3355_s0 = sphi %s3487_s0, %s4185_s0   ;;  %s3351_s29 = sphi %s3485_s29, %s4184_s29   ;;  %s3347_s28 = sphi %s3483_s28, %s4183_s28   ;;  %s3343_s27 = sphi %s3481_s27, %s4182_s27   ;;  %s3339_s26 = sphi %s3479_s26, %s4181_s26   ;;  %s3335_s25 = sphi %s3477_s25, %s4180_s25   ;;  %s3331_s24 = sphi %s3475_s24, %s4179_s24  }
  0x27   : > { %4111 = sst [smem:[#allocation32_spill]] %s3339_s26  ;;  %p215_p0 = scmp.ne.s32.totalorder %s3335_s25, %s3331_s24 }
  0x28   : > { %4112 = sst [smem:[#allocation33_spill]] %s3343_s27  ;;  %p4077_p1 = scmp.eq.s32.totalorder %s3529_s20, 0 }
  0x29   : > { %4113 = sst [smem:[#allocation34_spill]] %s3347_s28  ;;  %p2290_p2 = scmp.ge.s32.totalorder %s3371_s1, 1 }
  0x2a   : > { %4114 = sst [smem:[#allocation35_spill]] %s3351_s29  ;;  %p512_p3 = scmp.lt.s32.totalorder %s3371_s1, 5 }
  0x2b   : > { %4115 = sst [smem:[#allocation36_spill]] %s3355_s0  ;;  %p3537_p4 = por %p215_p0, %p4077_p1 }
  0x2c   : > { %4116 = sst [smem:[#allocation37_spill]] %s3359_s30  ;;  %p3544_p5 = pnand %p2290_p2, %p512_p3 }
  0x2d   : > { %4117 = sst [smem:[#allocation38_spill]] %s3363_s18  ;;  %s3373_s24 = smov [#allocation5]  }
  0x2e   : > { %4118 = sst [smem:[#allocation39_spill]] %s3367_s19  ;;  %p2678_p6 = pneg %p3544_p5 }
  0x2f   : > { %4119 = sst [smem:[#allocation40_spill]] %s3371_s1  ;;  %s525_s14 = sshll.u32 %s3373_s24, 4  ;;  %s526_s14 = int_to_ptr.vmem [resolvable:$true] %s525_s14 }
  0x30   : > { %s4120_s21 = scalar_select %p3537_p4, 1, 0 }
  0x31   : > { %s4122_s17 = sld [smem:[#allocation49_spill]]  ;;  %p3552_p7 = pnand %p2678_p6, %p4077_p1 }
  0x32   : > { %4121 = sst [smem:[#allocation41_spill]] %s4120_s21  ;;  %s4068_s10 = smov 64  }
  0x33   : > { %s4123_s16 = scalar_select %p3544_p5, 1, 0 }
  0x34   : > { %s4126_s3 = sld [smem:[#allocation51_spill]]  ;;  %s4070_s5 = smov 4  }
  0x35   : > { %4124 = sst [smem:[#allocation42_spill]] %s4123_s16  ;;  %s3376_s24 = smov [#allocation8]  }
  0x36   : > { %s552_s0 = sshll.u32 %s3376_s24, 4  ;;  %p74_p8 = scmp.eq.s32.totalorder %s3371_s1, 0  ;;  %s553_s0 = int_to_ptr.vmem [resolvable:$true] %s552_s0 }
  0x37   : > { %s523_s30 = sshll.u32 %s4122_s17, 4  ;;  %p209_p9 = scmp.ne.s32.totalorder %s3339_s26, %s3335_s25  ;;  %s524_s30 = int_to_ptr.hbm [resolvable:$true] %s523_s30 }
  0x38   : > { %2681 = dma.hbm_to_vmem [thread:$0]  (!%p3552_p7), %s524_s30, 1536, %s526_s14, [#allocation6], %s4068_s10, %s4068_s10, %s4070_s5  }
  0x39   : > { %p2724_p10 = scmp.lt.s32.totalorder %s3371_s1, 4  ;;  %s3572_s23 = sand.u32 1, %s3371_s1  }
  0x3a   : > { %s550_s11 = sshll.u32 %s4126_s3, 4  ;;  %s3575_s3 = sand.u32 1, %s3339_s26   ;;  %s551_s11 = int_to_ptr.hbm [resolvable:$true] %s550_s11 }
  0x3b   : > { %2687 = dma.hbm_to_vmem [thread:$0]  (!%p3552_p7), %s551_s11, 16, %s553_s0, [#allocation9]  }
  0x3c   : > { %p211_p11 = por %p209_p9, %p74_p8  ;;  %s4127_s6 = sld [smem:[#allocation54_spill]] }
  0x3d   : > { %s604_s0 = scalar_lea.vmem [#allocation11], %s3575_s3  ;;  %s2640_s22 = smul.u32 3, %s3575_s3 }
  0x3e   : > { %s611_s10 = sshll.u32 %s604_s0, 4  ;;  %p3586_p12 = pnand %p2724_p10, %p211_p11  ;;  %s612_s10 = int_to_ptr.vmem [resolvable:$true] %s611_s10 }
  0x3f   : > { %s2641_s21 = smul.u32 3, %s3363_s18  ;;  %s4076_s14 = scalar_lea.sflag [#allocation12], %s3572_s23 }
  0x40   : > { %s4129_s8 = sld [smem:[#allocation56_spill]]  ;;  %s644_s25 = scalar_lea.vmem [#allocation14], %s2640_s22 }
  0x41   : > { %s652_s16 = sshll.u32 %s644_s25, 4  ;;  %s4079_s15 = scalar_lea.sflag [#allocation15], %s3572_s23  ;;  %s653_s16 = int_to_ptr.vmem [resolvable:$true] %s652_s16 }
  0x42   : > { %s607_s24 = scalar_lea.hbm %s4127_s6, %s3363_s18  ;;  %s4130_s12 = sld [smem:[#allocation60_spill]] }
  0x43   : > { %s609_s11 = sshll.u32 %s607_s24, 4  ;;  %s4078_s25 = scalar_lea.sflag [#allocation18], %s3572_s23  ;;  %s610_s11 = int_to_ptr.hbm [resolvable:$true] %s609_s11 }
  0x44   : > { %2697 = dma.hbm_to_vmem [thread:$0]  (!%p3586_p12), %s610_s11, 16, %s612_s10, %s4076_s14  }
  0x45   : > { %s696_s14 = scalar_lea.vmem [#allocation17], %s3575_s3  ;;  %s4131_s2 = sld [smem:[#allocation50_spill]] }
  0x46   : > { %s648_s0 = scalar_lea.hbm %s4129_s8, %s2641_s21  ;;  %s703_s30 = sshll.u32 %s696_s14, 4  ;;  %s704_s30 = int_to_ptr.vmem [resolvable:$true] %s703_s30 }
  0x47   : > { %s650_s6 = sshll.u32 %s648_s0, 4  ;;  %s3377_s9 = smov [#allocation7]   ;;  %s651_s6 = int_to_ptr.hbm [resolvable:$true] %s650_s6 }
  0x48   : > { %2703 = dma.hbm_to_vmem [thread:$0]  (!%p3586_p12), %s651_s6, 48, %s653_s16, %s4079_s15  }
  0x49   : > { %s699_s10 = scalar_lea.hbm %s4130_s12, %s3363_s18  ;;  %s540_s13 = sshll.u32 %s3377_s9, 4  ;;  %s541_s13 = int_to_ptr.vmem [resolvable:$true] %s540_s13 }
  0x4a   : > { %s701_s11 = sshll.u32 %s699_s10, 4  ;;  %s4132_s4 = sld [smem:[#allocation52_spill]]  ;;  %s702_s11 = int_to_ptr.hbm [resolvable:$true] %s701_s11 }
  0x4b   : > { %2709 = dma.hbm_to_vmem [thread:$0]  (!%p3586_p12), %s702_s11, 16, %s704_s30, %s4078_s25  }
  0x4c   : > { %s538_s6 = sshll.u32 %s4131_s2, 4  ;;  %s3378_s0 = smov [#allocation10]   ;;  %s539_s6 = int_to_ptr.hbm [resolvable:$true] %s538_s6 }
  0x4d   : > { %2684 = dma.hbm_to_vmem [thread:$0]  (!%p3552_p7), %s539_s6, 128, %s541_s13, [#allocation6]  }
  0x4e   : > { %s564_s10 = sshll.u32 %s3378_s0, 4  ;;  %s2289_s11 = sadd.s32 4294967294, %s3371_s1   ;;  %s565_s10 = int_to_ptr.vmem [resolvable:$true] %s564_s10 }
  0x4f   : > { %s56_s30 = sadd.s32 1, %s3363_s18  ;;  %s59_s21 = sadd.s32 1, %s3367_s19 }
  0x50   : > { %s562_s24 = sshll.u32 %s4132_s4, 4  ;;  %p57_p13 = scmp.ge.s32.totalorder %s56_s30, 2  ;;  %s563_s24 = int_to_ptr.hbm [resolvable:$true] %s562_s24 }
  0x51   : > { %2690 = dma.hbm_to_vmem [thread:$0]  (!%p3552_p7), %s563_s24, 16, %s565_s10, [#allocation9]  }
  0x52   : > { %s66_s22 = sadd.s32 1, %s3351_s29  ;;  %p73_p0 = scmp.ne.s32.totalorder %s3351_s29, %s3347_s28 }
  0x53   : > { %s4190_s30 = smov (%p57_p13, %s56_s30), 0  ;;  %s4192_s21 = smov (!%p57_p13, %s59_s21), %s3367_s19 }
  0x54   : > { %4133 = sst [smem:[#allocation43_spill]] %s4190_s30  ;;  %p3639_p2 = por %p74_p8, %p73_p0 }
  0x55   : > { %p79_p3 = scmp.ne.s32.totalorder %s3347_s28, %s3343_s27  ;;  %p61_p6 = scmp.ge.s32.totalorder %s4192_s21, 2 }
  0x56   : > { %s199_s6 = ssub.s32 %s3363_s18, %s4190_s30  ;;  %s4137_s13 = sadd.s32 1, %s3339_s26 }
  0x57   : > { %p3652_p7 = por %p4077_p1, %p79_p3  ;;  %p200_p9 = scmp.eq.s32.totalorder %s199_s6, 0 }
  0x58   : > { %s4194_s21 = smov (%p61_p6, %s4192_s21), 0  ;;  %p499_p8 = scmp.eq.s32.totalorder %s3529_s20, 3 }
  0x59   : > { %4136 = sst [smem:[#allocation44_spill]] %s4194_s21  ;;  %s63_s14 = ssub.s32 %s3367_s19, %s4194_s21 }
  0x5a   : > { %s3661_s16 = scalar_select %p200_p9, %s3339_s26, %s4137_s13  }
  0x5b   : > { %p64_p11 = scmp.eq.s32.totalorder %s63_s14, 0  ;;  %p505_p13 = scmp.eq.s32.totalorder %s2289_s11, 3 }
  0x5c   : > { %4138 = sst [smem:[#allocation45_spill]] %s3661_s16  ;;  %p3669_p1 = por %p499_p8, %p73_p0 }
  0x5d   : > { %s575_s0 = sand.u32 1, %s3351_s29   ;;  %p3680_p6 = por %p505_p13, %p79_p3 }
  0x5e   : > { %s3675_s10 = scalar_select %p64_p11, %s3351_s29, %s66_s22  }
  0x5f   : > { %s4141_s6 = scalar_select %p3680_p6, 1, 0 }
  0x60   : > { %4140 = sst [smem:[#allocation46_spill]] %s3675_s10  ;;  %s2296_s13 = sshll.u32 %s575_s0, 3 }
  0x61   : > { %4142 = sst [smem:[#allocation47_spill]] %s4141_s6  ;;  %s2574_s25 = sshll.u32 %s3367_s19, 3 }
  0x62   : > { %s4143_s14 = sld [smem:[#allocation48_spill]]  ;;  %s579_s8 = scalar_lea.vmem [#allocation2], %s2296_s13 }
  0x63   : > { %s588_s12 = sshll.u32 %s579_s8, 4  ;;  %p2692_p0 = pnand %p2724_p10, %p3639_p2  ;;  %s589_s12 = int_to_ptr.vmem [resolvable:$true] %s588_s12 }
  0x64   : > { %s2638_s22 = smul.u32 192, %s3575_s3  ;;  %s576_s30 = scalar_lea.sflag [#allocation3], %s575_s0 }
  0x65   : > { %s2639_s21 = smul.u32 192, %s3363_s18  ;;  %s4144_s7 = sld [smem:[#allocation55_spill]] }
  0x66   : > { %s3380_s17 = smov 12   ;;  %s4145_s13 = scalar_lea.sflag [#allocation12], %s3572_s23 }
  0x67   : > { %s2300_s0 = sshll.u32 %s3575_s3, 6  ;;  %s4146_s19 = sld [smem:[#allocation57_spill]] }
  0x68   : > { %s584_s4 = scalar_lea.hbm %s4143_s14, %s2574_s25  ;;  %s3379_s25 = smov 192  }
  0x69   : > { %s586_s11 = sshll.u32 %s584_s4, 4  ;;  %s622_s4 = scalar_lea.vmem [#allocation13], %s2638_s22  ;;  %s587_s11 = int_to_ptr.hbm [resolvable:$true] %s586_s11 }
  0x6a   : > { %2694 = dma.hbm_to_vmem [thread:$0]  (!%p2692_p0), %s587_s11, 128, %s589_s12, %s576_s30  }
  0x6b   : > { %s627_s2 = scalar_lea.hbm %s4144_s7, %s2639_s21  ;;  %s630_s8 = sshll.u32 %s622_s4, 4  ;;  %s631_s8 = int_to_ptr.vmem [resolvable:$true] %s630_s8 }
  0x6c   : > { %s628_s15 = sshll.u32 %s627_s2, 4  ;;  %s2575_s12 = sshll.u32 %s3363_s18, 6  ;;  %s629_s15 = int_to_ptr.hbm [resolvable:$true] %s628_s15 }
  0x6d   : > { %2700 = dma.hbm_to_vmem [thread:$0]  (!%p3586_p12), %s629_s15, 3072, %s631_s8, %s4145_s13, %s3379_s25, %s3379_s25, %s3380_s17  }
  0x6e   : > { %s668_s21 = scalar_lea.hbm %s4146_s19, %s2575_s12  ;;  %s663_s11 = scalar_lea.vmem [#allocation16], %s2300_s0 }
  0x6f   : > { %s669_s10 = sshll.u32 %s668_s21, 4  ;;  %s671_s22 = sshll.u32 %s663_s11, 4  ;;  %s670_s10 = int_to_ptr.hbm [resolvable:$true] %s669_s10  ;;  %s672_s22 = int_to_ptr.vmem [resolvable:$true] %s671_s22 }
  0x70   : > { %s4147_s2 = smov 4   ;;  %s4148_s4 = smov 64  }
  0x71   : > { %s4149_s7 = scalar_lea.sflag [#allocation15], %s3572_s23  ;;  %s4150_s25 = sld [smem:[#allocation61_spill]] }
  0x72   : > { %2706 = dma.hbm_to_vmem [thread:$0]  (!%p3586_p12), %s670_s10, 1024, %s672_s22, %s4149_s7, %s4148_s4, %s4148_s4, %s4147_s2  }
  0x73   : > { %s714_s30 = scalar_lea.vmem [#allocation19], %s2300_s0  ;;  %s4151_s19 = scalar_lea.sflag [#allocation18], %s3572_s23 }
  0x74   : > { %s722_s14 = sshll.u32 %s714_s30, 4  ;;  %s4152_s18 = sld [smem:[#allocation63_spill]]  ;;  %s723_s14 = int_to_ptr.vmem [resolvable:$true] %s722_s14 }
  0x75   : > { %s742_s7 = scalar_lea.vmem [#allocation20], %s2300_s0  ;;  %s739_s8 = scalar_lea.sflag [#allocation21], %s3575_s3 }
  0x76   : > { %s750_s10 = sshll.u32 %s742_s7, 4  ;;  %s3735_s23 = sand.u32 (!%p3544_p5), 1, %s3347_s28   ;;  %s751_s10 = int_to_ptr.vmem [resolvable:$true] %s750_s10 }
  0x77   : > { %s719_s17 = scalar_lea.hbm %s4150_s25, %s2575_s12 }
  0x78   : > { %s720_s13 = sshll.u32 %s719_s17, 4  ;;  %768 = sbr.rel (%p3544_p5) target bundleno = 2512 (0x9d0), region = 88  ;;  %s721_s13 = int_to_ptr.hbm [resolvable:$true] %s720_s13 }
  0x79   : > { %2712 = dma.hbm_to_vmem [thread:$0]  (!%p3586_p12), %s721_s13, 1024, %s723_s14, %s4151_s19, %s4148_s4, %s4148_s4, %s4147_s2  }
  0x7a   : > { %s747_s29 = scalar_lea.hbm %s4152_s18, %s2575_s12  ;;  %s4085_s18 = sshll.u32 (!%p3544_p5), %s3735_s23, 3 }
  0x7b   : > { %s748_s22 = sshll.u32 %s747_s29, 4  ;;  %s771_s29 = scalar_lea.sflag (!%p3544_p5), [#allocation3], %s3735_s23  ;;  %s749_s22 = int_to_ptr.hbm [resolvable:$true] %s748_s22 }
  0x7c   : > { %2715 = dma.hbm_to_vmem [thread:$0]  (!%p3586_p12), %s749_s22, 1024, %s751_s10, %s739_s8, %s4148_s4, %s4148_s4, %s4147_s2  }
  0x7d   : > { %s3741_s0 = scalar_lea.vmem [#allocation2], %s4085_s18 }
  0x7e   : > { %3298 = dma.done.wait (%p3652_p7), %s771_s29, 128  }
  0x7f   : > { %3300 = vsyncadd (%p3652_p7), %s771_s29, 4294967168  ;;  %p4154_p10 = scmp.eq.s32.totalorder %s3529_s20, 0 }
  0x81   : > { %3302 = dma.done.wait (%p4154_p10), [#allocation6], 1664   ;;  %p4155_p5 = pmov %p4154_p10 }
  0x83   : > { %3304 = vsyncadd (%p4155_p5), [#allocation6], 4294965632  ;;  %p4156_p12 = pmov %p4155_p5 }
  0x84   : > { %p4157_p2 = pmov %p4155_p5 }
  0x85   : > { %3306 = dma.done.wait (%p4156_p12), [#allocation9], 32  }
  0x86   : > { %3308 = vsyncadd (%p4157_p2), [#allocation9], 4294967264  ;;  %s4158_s3 = sld [smem:[#allocation31_spill]]  ;;  %s800_s12 = sand.u32 1, %s3529_s20  }
  0x87   : > { %s801_s9 = scalar_lea.sflag [#allocation12], %s800_s12 }
  0x8c   : > { %s3757_s2 = sand.u32 1, %s4158_s3  }
  0x8d   : > { %3310 = dma.done.wait (%p3537_p4), %s801_s9, 3088  }
  0x8e   : > { %3312 = vsyncadd (%p3537_p4), %s801_s9, 4294964208  ;;  %s2642_s25 = smul.u32 192, %s3757_s2  ;;  %s820_s30 = scalar_lea.sflag [#allocation15], %s800_s12 }
  0x8f   : > { %s2643_s17 = smul.u32 3, %s3757_s2 }
  0x90   : > { %s3766_s13 = scalar_lea.vmem [#allocation13], %s2642_s25 }
  0x91   : > { %s3768_s14 = scalar_lea.vmem [#allocation14], %s2643_s17 }
  0x92   : > { %3314 = dma.done.wait (%p3537_p4), %s820_s30, 1072  }
  0x93   : > { %3316 = vsyncadd (%p3537_p4), %s820_s30, 4294966224  ;;  %s2315_s20 = sshll.u32 %s3757_s2, 6  ;;  %s840_s21 = scalar_lea.sflag [#allocation18], %s800_s12 }
  0x94   : > { %s3775_s19 = scalar_lea.vmem [#allocation16], %s2315_s20 }
  0x95   : > { %3318 = dma.done.wait (%p3537_p4), %s840_s21, 1040  }
  0x96   : > { %3320 = vsyncadd (%p3537_p4), %s840_s21, 4294966256  ;;  %s3782_s7 = scalar_lea.vmem [#allocation19], %s2315_s20  ;;  %s859_s10 = scalar_lea.sflag [#allocation21], %s3757_s2 }
  0x97   : > { %s3785_s22 = scalar_lea.vmem [#allocation20], %s2315_s20 }
  0x98   : > { %3322 = dma.done.wait (%p3537_p4), %s859_s10, 1024  }
  0x99   : > { %3324 = vsyncadd (%p3537_p4), %s859_s10, 4294966272  ;;  %s4160_s8 = sld [smem:[#allocation36_spill]]  ;;  %v978_v0 = vlaneseq  ;;  %s4166_s29 = sshll.u32 %s3735_s23, 3 }
  0x9a   : > { %s4161_s12 = sld [smem:[#allocation53_spill]]  ;;  %s3820_s3 = scalar_lea.vmem [#allocation22], %s4166_s29 }
  0x9b   : > { %v3795_v1 = vand.u32 127, %v978_v0  ;;  %s4162_s17 = sld [smem:[#allocation58_spill]] }
  0x9c   : > { %s4163_s10 = sld [smem:[#allocation59_spill]] }
  0x9d   : > { %vm980_vm0 = vcmp.lt.s32.totalorder %v3795_v1, 32  ;;  %s4164_s28 = sld [smem:[#allocation62_spill]] }
  0x9e   : > { %s4165_s27 = sld [smem:[#allocation64_spill]] }
  0x9f   : > { %p962_p3 = scmp.lt.s32.totalorder %s4160_s8, 2  ;;  %p2319_p4 = scmp.ne.s32.totalorder %s4160_s8, 0 }
  0xa1   : > { %s3793_s15 = scalar_select %p962_p3, %s4160_s8, 2 }
  0xa2   : > { %984 = sbr.rel (%p2319_p4) target bundleno = 597 (0x255), region = 140 }
  0xa3   : > { %s964_s9 = scalar_lea.vmem %s4161_s12, %s3793_s15  ;;  %s967_s30 = scalar_lea.vmem %s4162_s17, %s3793_s15 }
  0xa4   : > { %s970_s11 = scalar_lea.vmem %s4163_s10, %s3793_s15  ;;  %s973_s16 = scalar_lea.vmem %s4164_s28, %s3793_s15 }
  0xa5   : > { %s976_s1 = scalar_lea.vmem %s4165_s27, %s3793_s15 }
  0xa7   : > { %v2585_v2 = vld [vmem:[#allocation5 + $0x38] sm:$0xff]  ;;  %v2584_v4 = vld [vmem:[#allocation5 + $0x30] sm:$0xff]  ;;  %v2583_v6 = vld [vmem:[#allocation5 + $0x28] sm:$0xff]  ;;  %vm1089_vm1 = vcmask 523264  }
  0xa8   : > { %v2589_v3 = vld [vmem:[#allocation5 + $0x58] sm:$0xff]  ;;  %1093 = vmatpush.bf16.msra.mxu0 %v2585_v2  ;;  %v2588_v5 = vld [vmem:[#allocation5 + $0x50] sm:$0xff]  ;;  %v2587_v7 = vld [vmem:[#allocation5 + $0x48] sm:$0xff] }
  0xa9   : > { %1110 = vmatpush.bf16.msra.mxu1 %v2589_v3  ;;  %v985_v8 = vld [vmem:[%s3741_s0] sm:$0xff]  ;;  %v2582_v9 = vld [vmem:[#allocation5 + $0x20] sm:$0xff]  ;;  %v2579_v15 = vld [vmem:[#allocation5 + $0x8] sm:$0xff] }
  0xaa   : > { %v1013_v10 = vunpack.c.h.b16 %v985_v8  ;;  %v2586_v11 = vld [vmem:[#allocation5 + $0x40] sm:$0xff]  ;;  %v2581_v12 = vld [vmem:[#allocation5 + $0x18] sm:$0xff]  ;;  %v2580_v14 = vld [vmem:[#allocation5 + $0x10] sm:$0xff]  ;;  %v1012_v16 = vunpack.c.l.b16 %v985_v8 }
  0xab   : > { %v2578_v17 = vld [vmem:[#allocation5] sm:$0xff]  ;;  %v2830_v40 = vld [vmem:[#allocation8] ss:$0 sm:$0xff]  ;;  %v2831_v42 = vld [vmem:[#allocation10] ss:$0 sm:$0xff] }
  0xac   : > { %1094 = vmatpush.bf16.msra.mxu0 %v2584_v4  ;;  %v1015_v13 = vpack.c.b16 %v1013_v10, %v1013_v10  ;;  %v1014_v18 = vpack.c.b16 %v1012_v16, %v1012_v16  ;;  %v1010_v21 = vld [vmem:[#allocation7] sm:$0xff] }
  0xad   : > { %1111 = vmatpush.bf16.msra.mxu1 %v2588_v5 }
  0xb0   : > { %1095 = vmatpush.bf16.msra.mxu0 %v2583_v6 }
  0xb1   : > { %1112 = vmatpush.bf16.msra.mxu1 %v2587_v7 }
  0xb4   : > { %1096 = vmatpush.bf16.msra.mxu0 %v2582_v9 }
  0xb5   : > { %1113 = vmatpush.bf16.msra.mxu1 %v2586_v11 }
  0xb8   : > { %1097 = vmatpush.bf16.msra.mxu0 %v2581_v12  ;;  %2368 = vmatmul.msk.bf16.vlgmr.msra.gmra.mxu1 %vm1089_vm1, %v1015_v13 }
  0xbc   : > { %1098 = vmatpush.bf16.msra.mxu0 %v2580_v14 }
  0xc0   : > { %1099 = vmatpush.bf16.msra.mxu0 %v2579_v15 }
  0xc4   : > { %1100 = vmatpush.bf16.msra.mxu0 %v2578_v17 }
  0xc7   : > { %1101 = vmatmul.bf16.vlgmr.msra.gmra.mxu0 %v1014_v18 }
 0x135   : > { %v1115_v19 = vpop.f32.mrf.mxu1 }
 0x13d   : > { %v1117_v20 = vpop.f32.mrf.mxu1 }
 0x144   : > { %v1102_v22 = vpop.f32.mrf.mxu0 }
 0x145   : > { %v1103_v23 = vadd.f32 %v1102_v22, %v1010_v21 }
 0x147   : > { %v1116_v24 = vadd.f32 %v1115_v19, %v1103_v23 }
 0x149   : > { %1121 = vadd.xlane.f32.xlu0 %v1116_v24 }
 0x14c   : > { %v1104_v25 = vpop.f32.mrf.mxu0 }
 0x1bc   : > { %v1122_v26 = vpop.xlane.xlu0 %1121 }
 0x1bd   : > { %v1123_v27 = vmul.f32 0.03125, %v1122_v26 }
 0x1bf   : > { %v1124_v28 = vsub.f32 %v1116_v24, %v1123_v27 }
 0x1c1   : > { %v1125_v29 = vsel %vm980_vm0, %v1124_v28, 0.0 }
 0x1c2   : > { %v1126_v30 = vmul.f32 %v1125_v29, %v1125_v29 }
 0x1c4   : > { %1127 = vadd.xlane.f32.xlu0 %v1126_v30 }
 0x237   : > { %v1128_v31 = vpop.xlane.xlu0 %1127 }
 0x238   : > { %v1129_v32 = vmul.f32 0.03125, %v1128_v31 }
 0x23a   : > { %v1130_v33 = vadd.f32 1e-05, %v1129_v32 }
 0x23c   : > { %2832 = vrsqrt.f32 %v1130_v33  ;;  %vm1137_vm3 = vweird.f32 %v1130_v33 }
 0x242   : > { %v2833_v34 = vpop.eup %2832 }
 0x243   : > { %v1132_v35 = vmul.f32 %v2833_v34, %v1130_v33  ;;  %vm1138_vm2 = vweird.f32 %v2833_v34 }
 0x244   : > { %vm1139_vm4 = vmor %vm1137_vm3, %vm1138_vm2 }
 0x245   : > { %v1133_v36 = vmul.f32 %v2833_v34, %v1132_v35 }
 0x247   : > { %v1134_v37 = vmul.f32 0.5, %v1133_v36 }
 0x249   : > { %v1135_v38 = vsub.f32 1.5, %v1134_v37 }
 0x24b   : > { %v1136_v39 = vmul.f32 %v2833_v34, %v1135_v38 }
 0x24d   : > { %v1140_v41 = vsel %vm1139_vm4, %v2833_v34, %v1136_v39 }
 0x24e   : > { %v1141_v43 = vmul.f32 %v1140_v41, %v1125_v29 }
 0x250   : > { %v1145_v44 = vmul.f32 %v2830_v40, %v1141_v43 }
 0x252   : > { %v1149_v45 = vadd.f32 %v2831_v42, %v1145_v44 }
 0x254   : > { %1150 = vst [vmem:[%s3820_s3] sm:$0xff] %v1149_v45 }
 0x255 PF: > { %v2455_v47 = vld [vmem:[%s3766_s13 + $0xa8] sm:$0xf]  ;;  %v2612_v48 = vld [vmem:[%s3766_s13 + $0xb0] sm:$0xf0]  ;;  %v2611_v49 = vld [vmem:[%s3766_s13 + $0xac] sm:$0xf] }
 0x256   : > { %v2456_v50 = vor.u32 %v2612_v48, %v2455_v47  ;;  %v2457_v51 = vld [vmem:[%s3766_s13 + $0xb4] sm:$0xf0]  ;;  %v2463_v52 = vld [vmem:[%s3766_s13 + $0xb0] sm:$0xf]  ;;  %v2613_v53 = vld [vmem:[%s3766_s13 + $0xb8] sm:$0xf0] }
 0x257   : > { %v2460_v54 = vor.u32 %v2611_v49, %v2457_v51  ;;  %v2464_v55 = vor.u32 %v2613_v53, %v2463_v52  ;;  %v2443_v61 = vld [vmem:[%s3766_s13 + $0x90] sm:$0xf]  ;;  %v2609_v62 = vld [vmem:[%s3766_s13 + $0x98] sm:$0xf0]  ;;  %v2608_v63 = vld [vmem:[%s3766_s13 + $0x94] sm:$0xf] }
 0x258   : > { %1352 = vmatpush.bf16.msra.mxu0 %v2456_v50  ;;  %v2444_v0 = vor.u32 %v2609_v62, %v2443_v61  ;;  %v2445_v2 = vld [vmem:[%s3766_s13 + $0x9c] sm:$0xf0]  ;;  %v2451_v3 = vld [vmem:[%s3766_s13 + $0x98] sm:$0xf]  ;;  %v2610_v4 = vld [vmem:[%s3766_s13 + $0xa0] sm:$0xf0] }
 0x259   : > { %1365 = vmatpush.bf16.msra.mxu1 %v2460_v54  ;;  %1378 = vmatpush.bf16.msra.mxu2 %v2464_v55  ;;  %v2448_v5 = vor.u32 %v2608_v63, %v2445_v2  ;;  %v2452_v6 = vor.u32 %v2610_v4, %v2451_v3  ;;  %v2431_v7 = vld [vmem:[%s3766_s13 + $0x78] sm:$0xf]  ;;  %v2606_v8 = vld [vmem:[%s3766_s13 + $0x80] sm:$0xf0]  ;;  %v2605_v9 = vld [vmem:[%s3766_s13 + $0x7c] sm:$0xf] }
 0x25a   : > { %v2432_v10 = vor.u32 %v2606_v8, %v2431_v7  ;;  %v2433_v11 = vld [vmem:[%s3766_s13 + $0x84] sm:$0xf0]  ;;  %v2439_v12 = vld [vmem:[%s3766_s13 + $0x80] sm:$0xf]  ;;  %v2607_v13 = vld [vmem:[%s3766_s13 + $0x88] sm:$0xf0] }
 0x25b   : > { %v3828_v46 = vld [vmem:[%s3820_s3] sm:$0xff]  ;;  %v2436_v14 = vor.u32 %v2605_v9, %v2433_v11  ;;  %v2440_v15 = vor.u32 %v2607_v13, %v2439_v12  ;;  %v2419_v16 = vld [vmem:[%s3766_s13 + $0x60] sm:$0xf]  ;;  %v2602_v18 = vld [vmem:[%s3766_s13 + $0x64] sm:$0xf]  ;;  %s4168_s6 = scalar_lea.vmem [#allocation11], %s3757_s2 }
 0x25c   : > { %1154 = vadd.xlane.f32.xlu0 %v3828_v46  ;;  %1353 = vmatpush.bf16.msra.mxu0 %v2444_v0  ;;  %v2603_v17 = vld [vmem:[%s3766_s13 + $0x68] sm:$0xf0]  ;;  %v2421_v20 = vld [vmem:[%s3766_s13 + $0x6c] sm:$0xf0]  ;;  %v2427_v21 = vld [vmem:[%s3766_s13 + $0x68] sm:$0xf] }
 0x25d   : > { %1366 = vmatpush.bf16.msra.mxu1 %v2448_v5  ;;  %1379 = vmatpush.bf16.msra.mxu2 %v2452_v6  ;;  %v2420_v19 = vor.u32 %v2603_v17, %v2419_v16  ;;  %v2604_v22 = vld [vmem:[%s3766_s13 + $0x70] sm:$0xf0]  ;;  %v2424_v23 = vor.u32 %v2602_v18, %v2421_v20  ;;  %v2407_v25 = vld [vmem:[%s3766_s13 + $0x48] sm:$0xf]  ;;  %v2599_v27 = vld [vmem:[%s3766_s13 + $0x4c] sm:$0xf] }
 0x25e   : > { %v2428_v24 = vor.u32 %v2604_v22, %v2427_v21  ;;  %v2600_v26 = vld [vmem:[%s3766_s13 + $0x50] sm:$0xf0]  ;;  %v2409_v29 = vld [vmem:[%s3766_s13 + $0x54] sm:$0xf0]  ;;  %v2415_v30 = vld [vmem:[%s3766_s13 + $0x50] sm:$0xf] }
 0x25f   : > { %v2408_v28 = vor.u32 %v2600_v26, %v2407_v25  ;;  %v2601_v31 = vld [vmem:[%s3766_s13 + $0x58] sm:$0xf0]  ;;  %v2412_v32 = vor.u32 %v2599_v27, %v2409_v29  ;;  %v2395_v34 = vld [vmem:[%s3766_s13 + $0x30] sm:$0xf]  ;;  %v2596_v36 = vld [vmem:[%s3766_s13 + $0x34] sm:$0xf] }
 0x260   : > { %1354 = vmatpush.bf16.msra.mxu0 %v2432_v10  ;;  %v2416_v33 = vor.u32 %v2601_v31, %v2415_v30  ;;  %v2597_v35 = vld [vmem:[%s3766_s13 + $0x38] sm:$0xf0]  ;;  %v2397_v38 = vld [vmem:[%s3766_s13 + $0x3c] sm:$0xf0]  ;;  %v2403_v39 = vld [vmem:[%s3766_s13 + $0x38] sm:$0xf] }
 0x261   : > { %1367 = vmatpush.bf16.msra.mxu1 %v2436_v14  ;;  %1380 = vmatpush.bf16.msra.mxu2 %v2440_v15  ;;  %v2396_v37 = vor.u32 %v2597_v35, %v2395_v34  ;;  %v2598_v40 = vld [vmem:[%s3766_s13 + $0x40] sm:$0xf0]  ;;  %v2400_v41 = vor.u32 %v2596_v36, %v2397_v38  ;;  %v2383_v43 = vld [vmem:[%s3766_s13 + $0x18] sm:$0xf]  ;;  %v2593_v45 = vld [vmem:[%s3766_s13 + $0x1c] sm:$0xf] }
 0x262   : > { %v2404_v42 = vor.u32 %v2598_v40, %v2403_v39  ;;  %v2594_v44 = vld [vmem:[%s3766_s13 + $0x20] sm:$0xf0]  ;;  %v2385_v48 = vld [vmem:[%s3766_s13 + $0x24] sm:$0xf0]  ;;  %v2391_v49 = vld [vmem:[%s3766_s13 + $0x20] sm:$0xf] }
 0x263   : > { %v2384_v47 = vor.u32 %v2594_v44, %v2383_v43  ;;  %v2595_v50 = vld [vmem:[%s3766_s13 + $0x28] sm:$0xf0]  ;;  %v2388_v51 = vor.u32 %v2593_v45, %v2385_v48  ;;  %v2371_v53 = vld [vmem:[%s3766_s13] sm:$0xf]  ;;  %v2590_v55 = vld [vmem:[%s3766_s13 + $0x4] sm:$0xf] }
 0x264   : > { %1355 = vmatpush.bf16.msra.mxu0 %v2420_v19  ;;  %v2392_v52 = vor.u32 %v2595_v50, %v2391_v49  ;;  %v2591_v54 = vld [vmem:[%s3766_s13 + $0x8] sm:$0xf0]  ;;  %v2834_v9 = vld [vmem:[%s964_s9] ss:$0 sm:$0xff]  ;;  %vm1433_vm8 = vcmask 261120   ;;  %s3381_s18 = smov 32  }
 0x265   : > { %1368 = vmatpush.bf16.msra.mxu1 %v2424_v23  ;;  %1381 = vmatpush.bf16.msra.mxu2 %v2428_v24  ;;  %v2835_v12 = vld [vmem:[%s4168_s6] ss:$0 sm:$0xff]  ;;  %s3382_s0 = smov 64   ;;  %s3383_s4 = smov 96   ;;  %vm1572_vm9 = vcmask 1043456   ;;  %vm1514_vm10 = vcmp.lt.s32.totalorder %v3795_v1, 5 }
 0x266   : > { %v1216_v16 = vld [vmem:[%s3768_s14] sm:$0x7]  ;;  %vm1520_vm11 = vcmask 64512   ;;  %vm1659_vm12 = vcmask 523264   ;;  %vm1661_vm13 = vcmask 785408   ;;  %s4171_s9 = scalar_lea.vmem [#allocation17], %s3757_s2 }
 0x267   : > { %v1219_v17 = vperm.slane %v1216_v16, 1  ;;  %v1218_v21 = vperm.slane %v1216_v16, 0  ;;  %v1220_v22 = vperm.slane %v1216_v16, 2  ;;  %s4173_s25 = sld [smem:[#allocation37_spill]]  ;;  %s1977_s26 = sshll.u32 %s3820_s3, 4  ;;  %s1978_s26 = int_to_ptr.vmem [resolvable:$true] %s1977_s26 }
 0x268   : > { %1356 = vmatpush.bf16.msra.mxu0 %v2408_v28  ;;  %s4175_s10 = sld [smem:[#allocation65_spill]]  ;;  %s1965_s28 = scalar_lea.sflag [#allocation4], %s3735_s23 }
 0x269   : > { %1369 = vmatpush.bf16.msra.mxu1 %v2412_v32  ;;  %1382 = vmatpush.bf16.msra.mxu2 %v2416_v33 }
 0x26c   : > { %1357 = vmatpush.bf16.msra.mxu0 %v2396_v37 }
 0x26d   : > { %1370 = vmatpush.bf16.msra.mxu1 %v2400_v41  ;;  %1383 = vmatpush.bf16.msra.mxu2 %v2404_v42 }
 0x270   : > { %1358 = vmatpush.bf16.msra.mxu0 %v2384_v47 }
 0x271   : > { %1371 = vmatpush.bf16.msra.mxu1 %v2388_v51  ;;  %1384 = vmatpush.bf16.msra.mxu2 %v2392_v52 }
 0x2cf   : > { %v1155_v56 = vpop.xlane.xlu0 %1154 }
 0x2d0   : > { %v1156_v57 = vmul.f32 0.03125, %v1155_v56  ;;  %v2372_v56 = vor.u32 %v2591_v54, %v2371_v53  ;;  %v3384_v54 = vmov -1e+09  }
 0x2d2   : > { %v1157_v58 = vsub.f32 %v3828_v46, %v1156_v57  ;;  %v2373_v57 = vld [vmem:[%s3766_s13 + $0xc] sm:$0xf0]  ;;  %1359 = vmatpush.bf16.msra.mxu0 %v2372_v56 }
 0x2d3   : > { %v2376_v61 = vor.u32 %v2590_v55, %v2373_v57  ;;  %v1515_v55 = vsel %vm1514_vm10, 0.0, %v3384_v54 }
 0x2d4   : > { %v3840_v59 = vsel %vm980_vm0, %v1157_v58, 0.0  ;;  %v2379_v58 = vld [vmem:[%s3766_s13 + $0x8] sm:$0xf] }
 0x2d5   : > { %v1159_v60 = vmul.f32 %v3840_v59, %v3840_v59  ;;  %1372 = vmatpush.bf16.msra.mxu1 %v2376_v61 }
 0x2d7   : > { %1160 = vadd.xlane.f32.xlu0 %v1159_v60  ;;  %v2592_v60 = vld [vmem:[%s3766_s13 + $0x10] sm:$0xf0] }
 0x2d8   : > { %v2380_v62 = vor.u32 %v2592_v60, %v2379_v58 }
 0x2da   : > { %1385 = vmatpush.bf16.msra.mxu2 %v2380_v62 }
 0x34a   : > { %v1161_v63 = vpop.xlane.xlu0 %1160 }
 0x34b   : > { %v1162_v0 = vmul.f32 0.03125, %v1161_v63 }
 0x34d   : > { %v1163_v2 = vadd.f32 1e-05, %v1162_v0 }
 0x34f   : > { %2841 = vrsqrt.f32 %v1163_v2  ;;  %vm1170_vm6 = vweird.f32 %v1163_v2 }
 0x355   : > { %v2842_v3 = vpop.eup %2841 }
 0x356   : > { %v1165_v4 = vmul.f32 %v2842_v3, %v1163_v2  ;;  %vm1171_vm5 = vweird.f32 %v2842_v3 }
 0x357   : > { %vm1172_vm7 = vmor %vm1170_vm6, %vm1171_vm5 }
 0x358   : > { %v1166_v5 = vmul.f32 %v2842_v3, %v1165_v4 }
 0x35a   : > { %v1167_v6 = vmul.f32 0.5, %v1166_v5 }
 0x35c   : > { %v1168_v7 = vsub.f32 1.5, %v1167_v6 }
 0x35e   : > { %v1169_v8 = vmul.f32 %v2842_v3, %v1168_v7 }
 0x360   : > { %v1173_v10 = vsel %vm1172_vm7, %v2842_v3, %v1169_v8 }
 0x361   : > { %v1174_v11 = vmul.f32 %v1173_v10, %v3840_v59 }
 0x363   : > { %v1178_v13 = vmul.f32 %v2834_v9, %v1174_v11 }
 0x365   : > { %v1182_v14 = vadd.f32 %v2835_v12, %v1178_v13 }
 0x367   : > { %v1183_v15 = vpack.c.bf16 %v1182_v14, %v1182_v14 }
 0x369   : > { %1360 = vmatmul.bf16.vlgmr.msra.gmra.mxu0 %v1183_v15  ;;  %1373 = vmatmul.bf16.vlgmr.msra.gmra.mxu1 %v1183_v15 }
 0x36a   : > { %1386 = vmatmul.bf16.vlgmr.msra.gmra.mxu2 %v1183_v15 }
 0x3e6   : > { %v1361_v18 = vpop.f32.mrf.mxu0  ;;  %v1374_v19 = vpop.f32.mrf.mxu1 }
 0x3e7   : > { %v1375_v20 = vadd.f32 %v1374_v19, %v1219_v17  ;;  %v1362_v24 = vadd.f32 %v1361_v18, %v1218_v21 }
 0x3e9   : > { %1412 = vrot.lane.b32.xlu0 %v1375_v20, %s3381_s18  ;;  %1409 = vrot.lane.b32.xlu2 %v1375_v20, %s3382_s0  ;;  %v1415_v59 = vpack.c.bf16 %v1375_v20, %v1375_v20  ;;  %v1401_v30 = vpack.c.bf16 %v1362_v24, %v1362_v24 }
 0x3ea   : > { %1406 = vrot.lane.b32.xlu1 %v1375_v20, %s3383_s4 }
 0x3eb   : > { %v1438_v23 = vsel %vm1433_vm8, %v1415_v59, 0 }
 0x3ec   : > { %1447 = vmatpush.bf16.xpose.msrb.mxu0 %v1438_v23 }
 0x3ed   : > { %v1387_v25 = vpop.f32.mrf.mxu2 }
 0x3ee   : > { %v3899_v26 = vadd.f32 %v1387_v25, %v1220_v22  ;;  %v1363_v27 = vpop.f32.mrf.mxu0  ;;  %v1376_v28 = vpop.f32.mrf.mxu1 }
 0x3f0   : > { %v1429_v29 = vpack.c.bf16 %v3899_v26, %v3899_v26 }
 0x3f1   : > { %1395 = vrot.lane.b32.xlu2 %v1362_v24, %s3382_s0 }
 0x3f2   : > { %1392 = vrot.lane.b32.xlu1 %v1362_v24, %s3383_s4  ;;  %v1574_v31 = vsel %vm1572_vm9, %v1429_v29, 0 }
 0x3f3   : > { %1583 = vmatpush.bf16.msrb.mxu1 %v1574_v31  ;;  %2465 = vmatmul.msk.bf16.vlgmr.msrb.gmra.mxu0 %vm1433_vm8, %v1401_v30 }
 0x3f5   : > { %v1389_v32 = vpop.f32.mrf.mxu2 }
 0x3fa   : > { %1398 = vrot.lane.b32.xlu1 %v1362_v24, %s3381_s18 }
 0x443   : > { %v1410_v33 = vpop.permute.xlu2 %1409 }
 0x444   : > { %v1417_v35 = vpack.c.bf16 %v1410_v33, %v1410_v33 }
 0x446   : > { %v1476_v41 = vsel %vm1433_vm8, %v1417_v35, 0 }
 0x44b   : > { %v1396_v48 = vpop.permute.xlu2 %1395 }
 0x44c   : > { %v1403_v49 = vpack.c.bf16 %v1396_v48, %v1396_v48 }
 0x45b   : > { %v1413_v34 = vpop.permute.xlu0 %1412 }
 0x45c   : > { %v1418_v36 = vpack.c.bf16 %v1413_v34, %v1413_v34  ;;  %v1407_v37 = vpop.permute.xlu1 %1406 }
 0x45d   : > { %v1416_v38 = vpack.c.bf16 %v1407_v37, %v1407_v37 }
 0x45e   : > { %v1495_v39 = vsel %vm1433_vm8, %v1418_v36, 0 }
 0x45f   : > { %v1457_v40 = vsel %vm1433_vm8, %v1416_v38, 0  ;;  %1504 = vmatpush.bf16.xpose.msra.mxu0 %v1495_v39 }
 0x460   : > { %1466 = vmatpush.bf16.xpose.msra.mxu3 %v1457_v40 }
 0x464   : > { %v1393_v42 = vpop.permute.xlu1 %1392 }
 0x465   : > { %v1402_v43 = vpack.c.bf16 %v1393_v42, %v1393_v42 }
 0x467   : > { %2466 = vmatmul.msk.bf16.vlgmr.msra.gmra.mxu3 %vm1433_vm8, %v1402_v43 }
 0x468   : > { %1485 = vmatpush.bf16.xpose.msrb.mxu3 %v1476_v41 }
 0x46c   : > { %v1399_v44 = vpop.permute.xlu1 %1398 }
 0x46d   : > { %v1404_v45 = vpack.c.bf16 %v1399_v44, %v1399_v44 }
 0x46f   : > { %2468 = vmatmul.msk.bf16.vlgmr.msra.gmra.mxu0 %vm1433_vm8, %v1404_v45 }
 0x470   : > { %v1449_v47 = vpop.f32.mrf.mxu0 }
 0x471   : > { %v1510_v58 = vmul.f32 0.35355338, %v1449_v47 }
 0x473   : > { %v1516_v0 = vadd.f32 %v1515_v55, %v1510_v58 }
 0x475   : > { %v1521_v3 = vsel %vm1520_vm11, %v1516_v0, -inf }
 0x477   : > { %2467 = vmatmul.msk.bf16.vlgmr.msrb.gmra.mxu3 %vm1433_vm8, %v1403_v49 }
 0x478   : > { %v1451_v50 = vpop.f32.mrf.mxu0 }
 0x4ea   : > { %v1468_v51 = vpop.f32.mrf.mxu3 }
 0x4eb   : > { %v1511_v52 = vmul.f32 0.35355338, %v1468_v51 }
 0x4ec   : > { %v1506_v53 = vpop.f32.mrf.mxu0 }
 0x4ed   : > { %v1513_v56 = vmul.f32 0.35355338, %v1506_v53  ;;  %v1517_v57 = vadd.f32 %v1515_v55, %v1511_v52 }
 0x4ef   : > { %v1524_v60 = vsel %vm1520_vm11, %v1517_v57, -inf  ;;  %v1519_v61 = vadd.f32 %v1515_v55, %v1513_v56 }
 0x4f0   : > { %1525 = vmax.xlane.f32.xlu2 %v1524_v60 }
 0x4f1   : > { %v1530_v62 = vsel %vm1520_vm11, %v1519_v61, -inf }
 0x4f2   : > { %v1470_v63 = vpop.f32.mrf.mxu3  ;;  %1531 = vmax.xlane.f32.xlu0 %v1530_v62 }
 0x4f3   : > { %v2621_v63 = vld [vmem:[%s3775_s19 + $0x38] sm:$0xff] }
 0x4f4   : > { %v1508_v2 = vpop.f32.mrf.mxu0  ;;  %1732 = vmatpush.bf16.msra.mxu1 %v2621_v63 }
 0x4f5   : > { %v2619_v2 = vld [vmem:[%s3775_s19 + $0x28] sm:$0xff] }
 0x4f8   : > { %1522 = vmax.xlane.f32.xlu2 %v1521_v3  ;;  %v2618_v3 = vld [vmem:[%s3775_s19 + $0x20] sm:$0xff] }
 0x4fa   : > { %v1487_v4 = vpop.f32.mrf.mxu3 }
 0x4fb   : > { %v1512_v5 = vmul.f32 0.35355338, %v1487_v4  ;;  %v2617_v4 = vld [vmem:[%s3775_s19 + $0x18] sm:$0xff] }
 0x4fd   : > { %v1518_v6 = vadd.f32 %v1515_v55, %v1512_v5  ;;  %v2616_v5 = vld [vmem:[%s3775_s19 + $0x10] sm:$0xff] }
 0x4ff   : > { %v1527_v7 = vsel %vm1520_vm11, %v1518_v6, -inf }
 0x500   : > { %1528 = vmax.xlane.f32.xlu1 %v1527_v7  ;;  %v2614_v7 = vld [vmem:[%s3775_s19] sm:$0xff] }
 0x502   : > { %v1489_v8 = vpop.f32.mrf.mxu3 }
 0x563   : > { %v1526_v9 = vpop.xlane.xlu2 %1525 }
 0x564   : > { %v1534_v10 = vsub.f32 %v1517_v57, %v1526_v9 }
 0x565   : > { %v1532_v11 = vpop.xlane.xlu0 %1531 }
 0x566   : > { %v1539_v12 = vmul.f32 1.442695, %v1534_v10  ;;  %v1536_v13 = vsub.f32 %v1519_v61, %v1532_v11 }
 0x568   : > { %2843 = vpow2.f32 %v1539_v12  ;;  %v1543_v14 = vmul.f32 1.442695, %v1536_v13 }
 0x56a   : > { %2845 = vpow2.f32 %v1543_v14 }
 0x56b   : > { %v1523_v23 = vpop.xlane.xlu2 %1522 }
 0x56c   : > { %v1533_v24 = vsub.f32 %v1516_v0, %v1523_v23  ;;  %v2620_v0 = vld [vmem:[%s3775_s19 + $0x30] sm:$0xff] }
 0x56d   : > { %1733 = vmatpush.bf16.msra.mxu1 %v2620_v0 }
 0x56e   : > { %v2844_v15 = vpop.eup %2843  ;;  %v1537_v25 = vmul.f32 1.442695, %v1533_v24 }
 0x56f   : > { %v1548_v16 = vsel %vm1520_vm11, %v2844_v15, 0.0 }
 0x570   : > { %v2846_v17 = vpop.eup %2845  ;;  %1549 = vadd.xlane.f32.xlu2 %v1548_v16 }
 0x571   : > { %v1554_v18 = vsel %vm1520_vm11, %v2846_v17, 0.0  ;;  %1734 = vmatpush.bf16.msra.mxu1 %v2619_v2 }
 0x572   : > { %1555 = vadd.xlane.f32.xlu0 %v1554_v18 }
 0x573   : > { %v1529_v19 = vpop.xlane.xlu1 %1528 }
 0x574   : > { %v1535_v20 = vsub.f32 %v1518_v6, %v1529_v19  ;;  %v2615_v6 = vld [vmem:[%s3775_s19 + $0x8] sm:$0xff] }
 0x575   : > { %1735 = vmatpush.bf16.msra.mxu1 %v2618_v3 }
 0x576   : > { %v1541_v21 = vmul.f32 1.442695, %v1535_v20  ;;  %v2629_v20 = vld [vmem:[%s3782_s7 + $0x38] sm:$0xff] }
 0x578   : > { %2847 = vpow2.f32 %v1541_v21 }
 0x579   : > { %2849 = vpow2.f32 %v1537_v25  ;;  %1736 = vmatpush.bf16.msra.mxu1 %v2617_v4  ;;  %v2627_v25 = vld [vmem:[%s3782_s7 + $0x28] sm:$0xff] }
 0x57d   : > { %1737 = vmatpush.bf16.msra.mxu1 %v2616_v5 }
 0x57e   : > { %v2848_v59 = vpop.eup %2847 }
 0x57f   : > { %v1551_v22 = vsel %vm1520_vm11, %v2848_v59, 0.0  ;;  %v2850_v27 = vpop.eup %2849 }
 0x580   : > { %1552 = vadd.xlane.f32.xlu1 %v1551_v22  ;;  %v1545_v28 = vsel %vm1520_vm11, %v2850_v27, 0.0 }
 0x581   : > { %1738 = vmatpush.bf16.msra.mxu1 %v2615_v6 }
 0x585   : > { %1739 = vmatpush.bf16.msra.mxu1 %v2614_v7 }
 0x586   : > { %1426 = vrot.lane.b32.xlu0 %v3899_v26, %s3381_s18 }
 0x588   : > { %1420 = vrot.lane.b32.xlu2 %v3899_v26, %s3383_s4 }
 0x599   : > { %1423 = vrot.lane.b32.xlu1 %v3899_v26, %s3382_s0 }
 0x5b1   : > { %1546 = vadd.xlane.f32.xlu2 %v1545_v28  ;;  %v2625_v28 = vld [vmem:[%s3782_s7 + $0x18] sm:$0xff] }
 0x5e3   : > { %v1550_v29 = vpop.xlane.xlu2 %1549 }
 0x5e4   : > { %2851 = vrcp.f32 %v1550_v29  ;;  %v2624_v29 = vld [vmem:[%s3782_s7 + $0x10] sm:$0xff] }
 0x5e5   : > { %v1556_v34 = vpop.xlane.xlu0 %1555 }
 0x5e6   : > { %2853 = vrcp.f32 %v1556_v34 }
 0x5ea   : > { %v2852_v30 = vpop.eup %2851 }
 0x5eb   : > { %v1421_v31 = vpop.permute.xlu2 %1420  ;;  %v1562_v32 = vmul.f32 %v2852_v30, %v2844_v15  ;;  %v2836_v15 = vld [vmem:[%s967_s30] ss:$0 sm:$0xff]  ;;  %v2623_v30 = vld [vmem:[%s3782_s7 + $0x8] sm:$0xff] }
 0x5ec   : > { %v1430_v33 = vpack.c.bf16 %v1421_v31, %v1421_v31  ;;  %v2854_v36 = vpop.eup %2853  ;;  %v2622_v31 = vld [vmem:[%s3782_s7] sm:$0xff] }
 0x5ed   : > { %v1566_v26 = vpack.c.bf16 %v1562_v32, %v1562_v32  ;;  %v1564_v38 = vmul.f32 %v2854_v36, %v2846_v17 }
 0x5ee   : > { %v1593_v35 = vsel %vm1572_vm9, %v1430_v33, 0 }
 0x5ef   : > { %1602 = vmatpush.bf16.msrb.mxu2 %v1593_v35  ;;  %v1568_v41 = vpack.c.bf16 %v1564_v38, %v1564_v38 }
 0x5f2   : > { %2470 = vmatmul.msk.bf16.vlgmr.msrb.gmra.mxu2 %vm1520_vm11, %v1566_v26 }
 0x5f3   : > { %v1553_v42 = vpop.xlane.xlu1 %1552  ;;  %1846 = vmatpush.bf16.msra.mxu2 %v2629_v20 }
 0x5f4   : > { %2855 = vrcp.f32 %v1553_v42  ;;  %v2838_v42 = vld [vmem:[%s4171_s9] ss:$0 sm:$0xff] }
 0x5f8   : > { %v1427_v37 = vpop.permute.xlu0 %1426 }
 0x5f9   : > { %v1432_v39 = vpack.c.bf16 %v1427_v37, %v1427_v37 }
 0x5fa   : > { %v2856_v43 = vpop.eup %2855 }
 0x5fb   : > { %v1631_v40 = vsel %vm1572_vm9, %v1432_v39, 0  ;;  %v1563_v45 = vmul.f32 %v2856_v43, %v2848_v59  ;;  %v2837_v39 = vld [vmem:[%s970_s11] ss:$0 sm:$0xff] }
 0x5fc   : > { %1640 = vmatpush.bf16.msrb.mxu0 %v1631_v40 }
 0x5fd   : > { %v1567_v49 = vpack.c.bf16 %v1563_v45, %v1563_v45 }
 0x5ff   : > { %2472 = vmatmul.msk.bf16.vlgmr.msrb.gmra.mxu0 %vm1520_vm11, %v1568_v41 }
 0x60b   : > { %v1424_v44 = vpop.permute.xlu1 %1423 }
 0x60c   : > { %v1431_v47 = vpack.c.bf16 %v1424_v44, %v1424_v44 }
 0x60e   : > { %v1612_v48 = vsel %vm1572_vm9, %v1431_v47, 0  ;;  %v2637_v47 = vld [vmem:[%s3785_s22 + $0x38] sm:$0xff] }
 0x60f   : > { %1621 = vmatpush.bf16.msra.mxu3 %v1612_v48  ;;  %v2636_v48 = vld [vmem:[%s3785_s22 + $0x30] sm:$0xff] }
 0x612   : > { %2471 = vmatmul.msk.bf16.vlgmr.msra.gmra.mxu3 %vm1520_vm11, %v1567_v49  ;;  %v2635_v49 = vld [vmem:[%s3785_s22 + $0x28] sm:$0xff] }
 0x613   : > { %1949 = vmatpush.bf16.msrb.mxu3 %v2637_v47 }
 0x617   : > { %1950 = vmatpush.bf16.msrb.mxu3 %v2636_v48 }
 0x61b   : > { %1951 = vmatpush.bf16.msrb.mxu3 %v2635_v49 }
 0x624   : > { %v1547_v50 = vpop.xlane.xlu2 %1546 }
 0x625   : > { %2857 = vrcp.f32 %v1547_v50  ;;  %v2634_v50 = vld [vmem:[%s3785_s22 + $0x20] sm:$0xff] }
 0x626   : > { %1952 = vmatpush.bf16.msrb.mxu3 %v2634_v50 }
 0x62b   : > { %v2858_v51 = vpop.eup %2857 }
 0x62c   : > { %v1561_v52 = vmul.f32 %v2858_v51, %v2850_v27  ;;  %v2626_v27 = vld [vmem:[%s3782_s7 + $0x20] sm:$0xff]  ;;  %v2633_v51 = vld [vmem:[%s3785_s22 + $0x18] sm:$0xff] }
 0x62d   : > { %1953 = vmatpush.bf16.msrb.mxu3 %v2633_v51 }
 0x62e   : > { %v1565_v53 = vpack.c.bf16 %v1561_v52, %v1561_v52  ;;  %v2632_v52 = vld [vmem:[%s3785_s22 + $0x10] sm:$0xff] }
 0x630   : > { %2469 = vmatmul.msk.bf16.vlgmr.msrb.gmra.mxu1 %vm1520_vm11, %v1565_v53  ;;  %v2631_v53 = vld [vmem:[%s3785_s22 + $0x8] sm:$0xff] }
 0x631   : > { %1954 = vmatpush.bf16.msrb.mxu3 %v2632_v52 }
 0x635   : > { %1955 = vmatpush.bf16.msrb.mxu3 %v2631_v53 }
 0x675   : > { %v1604_v54 = vpop.f32.mrf.mxu2 }
 0x676   : > { %1647 = vrot.lane.b32.xlu1 %v1604_v54, %s3381_s18  ;;  %v2839_v54 = vld [vmem:[%s973_s16] ss:$0 sm:$0xff]  ;;  %s2571_s16 = sshll.u32 %s4173_s25, 3 }
 0x677   : > { %s1975_s29 = scalar_lea.hbm %s4175_s10, %s2571_s16 }
 0x678   : > { %s1979_s27 = sshll.u32 %s1975_s29, 4  ;;  %s1980_s27 = int_to_ptr.hbm [resolvable:$true] %s1979_s27 }
 0x679   : > { %s3239_s6 = sshra.s32 %s1980_s27, 4  ;;  %s3240_s6 = int_to_ptr.hbm [resolvable:$true] %s3239_s6 }
 0x67a   : > { %s3241_s18 = scalar_lea.hbm %s3240_s6, 8  ;;  %p3246_p11 = scmp.lt.s32.totalorder %s3240_s6, %s4175_s10 }
 0x67b   : > { %p3242_p7 = scmp.ne.s32.totalorder %s3240_s6, %s3241_s18 }
 0x67c   : > { %v1642_v55 = vpop.f32.mrf.mxu0 }
 0x67d   : > { %v1606_v56 = vpop.f32.mrf.mxu2  ;;  %p3243_p9 = pnand %p3242_p7, %p3669_p1 }
 0x67e   : > { %1655 = vrot.lane.b32.xlu1 %v1642_v55, %s3383_s4  ;;  %v2630_v56 = vld [vmem:[%s3785_s22] sm:$0xff] }
 0x67f   : > { %1956 = vmatpush.bf16.msrb.mxu3 %v2630_v56  ;;  %p3244_p8 = pneg %p3243_p9 }
 0x684   : > { %v1644_v57 = vpop.f32.mrf.mxu0 }
 0x695   : > { %v1623_v58 = vpop.f32.mrf.mxu3 }
 0x696   : > { %1651 = vrot.lane.b32.xlu0 %v1623_v58, %s3382_s0  ;;  %s3245_s0 = scalar_lea.hbm %s4175_s10, 16 }
 0x697   : > { %p3247_p13 = scmp.lt.s32.totalorder %s3245_s0, %s3241_s18 }
 0x699   : > { %p3248_p0 = por %p3247_p13, %p3246_p11 }
 0x69b   : > { %p3249_p10 = pnand %p3248_p0, %p3244_p8 }
 0x69d   : > { %v1625_v60 = vpop.f32.mrf.mxu3 }
 0x6ad   : > { %v1585_v61 = vpop.f32.mrf.mxu1 }
 0x6b5   : > { %v1587_v62 = vpop.f32.mrf.mxu1 }
 0x6e8   : > { %v1648_v8 = vpop.permute.xlu1 %1647 }
 0x6e9   : > { %v1658_v9 = vsel %vm1433_vm8, %v1585_v61, %v1648_v8 }
 0x6f0   : > { %v1656_v11 = vpop.permute.xlu1 %1655 }
 0x708   : > { %v1652_v10 = vpop.permute.xlu0 %1651 }
 0x709   : > { %v1660_v12 = vsel %vm1659_vm12, %v1658_v9, %v1652_v10 }
 0x70a   : > { %v1662_v13 = vsel %vm1661_vm13, %v1660_v12, %v1656_v11 }
 0x70b   : > { %v1663_v14 = vpack.c.bf16 %v1662_v13, %v1662_v13  ;;  %v2840_v13 = vld [vmem:[%s976_s1] ss:$0 sm:$0xff] }
 0x70d   : > { %1740 = vmatmul.bf16.vlgmr.msra.gmra.mxu1 %v1663_v14 }
 0x78a   : > { %v1741_v16 = vpop.f32.mrf.mxu1 }
 0x78b   : > { %v1742_v17 = vadd.f32 %v2836_v15, %v1741_v16 }
 0x78d   : > { %v3954_v18 = vadd.f32 %v1742_v17, %v3828_v46  ;;  %v2628_v46 = vld [vmem:[%s3782_s7 + $0x30] sm:$0xff] }
 0x78e   : > { %1847 = vmatpush.bf16.msra.mxu2 %v2628_v46 }
 0x78f   : > { %1748 = vadd.xlane.f32.xlu0 %v3954_v18 }
 0x792   : > { %v1743_v19 = vpop.f32.mrf.mxu1  ;;  %1848 = vmatpush.bf16.msra.mxu2 %v2627_v25 }
 0x796   : > { %1849 = vmatpush.bf16.msra.mxu2 %v2626_v27 }
 0x79a   : > { %1850 = vmatpush.bf16.msra.mxu2 %v2625_v28 }
 0x79e   : > { %1851 = vmatpush.bf16.msra.mxu2 %v2624_v29 }
 0x7a2   : > { %1852 = vmatpush.bf16.msra.mxu2 %v2623_v30 }
 0x7a6   : > { %1853 = vmatpush.bf16.msra.mxu2 %v2622_v31 }
 0x802   : > { %v1749_v21 = vpop.xlane.xlu0 %1748 }
 0x803   : > { %v1750_v59 = vmul.f32 0.03125, %v1749_v21 }
 0x805   : > { %v1751_v22 = vsub.f32 %v3954_v18, %v1750_v59 }
 0x807   : > { %v1752_v23 = vsel %vm980_vm0, %v1751_v22, 0.0 }
 0x808   : > { %v1753_v24 = vmul.f32 %v1752_v23, %v1752_v23 }
 0x80a   : > { %1754 = vadd.xlane.f32.xlu1 %v1753_v24 }
 0x87d   : > { %v1755_v1 = vpop.xlane.xlu1 %1754 }
 0x87e   : > { %v1756_v32 = vmul.f32 0.03125, %v1755_v1 }
 0x880   : > { %v1757_v33 = vadd.f32 1e-05, %v1756_v32 }
 0x882   : > { %2859 = vrsqrt.f32 %v1757_v33  ;;  %vm1764_vm15 = vweird.f32 %v1757_v33 }
 0x888   : > { %v2860_v34 = vpop.eup %2859 }
 0x889   : > { %v1759_v35 = vmul.f32 %v2860_v34, %v1757_v33  ;;  %vm1765_vm14 = vweird.f32 %v2860_v34 }
 0x88a   : > { %vm1766_vm0 = vmor %vm1764_vm15, %vm1765_vm14 }
 0x88b   : > { %v1760_v26 = vmul.f32 %v2860_v34, %v1759_v35 }
 0x88d   : > { %v1761_v36 = vmul.f32 0.5, %v1760_v26 }
 0x88f   : > { %v1762_v37 = vsub.f32 1.5, %v1761_v36 }
 0x891   : > { %v1763_v38 = vmul.f32 %v2860_v34, %v1762_v37 }
 0x893   : > { %v1767_v40 = vsel %vm1766_vm0, %v2860_v34, %v1763_v38 }
 0x894   : > { %v1768_v41 = vmul.f32 %v1767_v40, %v1752_v23 }
 0x896   : > { %v1772_v43 = vmul.f32 %v2837_v39, %v1768_v41 }
 0x898   : > { %v1776_v44 = vadd.f32 %v2838_v42, %v1772_v43 }
 0x89a   : > { %v1777_v45 = vpack.c.bf16 %v1776_v44, %v1776_v44 }
 0x89c   : > { %1854 = vmatmul.bf16.vlgmr.msra.gmra.mxu2 %v1777_v45 }
 0x91f   : > { %v1855_v55 = vpop.f32.mrf.mxu2 }
 0x920   : > { %v1856_v57 = vadd.f32 %v2839_v54, %v1855_v55 }
 0x922   : > { %v2537_v58 = vmul.f32 -1.702, %v1856_v57 }
 0x924   : > { %v1861_v60 = vmul.f32 1.442695, %v2537_v58 }
 0x926   : > { %2861 = vpow2.f32 %v1861_v60 }
 0x927   : > { %v1857_v61 = vpop.f32.mrf.mxu2 }
 0x92c   : > { %v2862_v62 = vpop.eup %2861 }
 0x92d   : > { %v1863_v63 = vadd.f32 1.0, %v2862_v62 }
 0x92f   : > { %2863 = vrcp.f32 %v1863_v63  ;;  %v1875_v4 = vand.u32 2147483648, %v1863_v63  ;;  %v1873_v6 = vand.u32 2147483647, %v1863_v63  ;;  %vm1869_vm2 = vweird.f32 %v1863_v63 }
 0x931   : > { %v1876_v8 = vor.u32 1.1754944e-38, %v1875_v4  ;;  %vm1874_vm4 = vcmp.eq.f32.partialorder %v1873_v6, 8.507059e+37 }
 0x935   : > { %v2864_v0 = vpop.eup %2863 }
 0x936   : > { %v1865_v2 = vmul.f32 %v2864_v0, %v1863_v63  ;;  %vm1870_vm1 = vweird.f32 %v2864_v0 }
 0x937   : > { %vm1871_vm3 = vmor %vm1869_vm2, %vm1870_vm1 }
 0x938   : > { %v1866_v3 = vsub.f32 1.0, %v1865_v2 }
 0x93a   : > { %v1867_v5 = vmul.f32 %v2864_v0, %v1866_v3 }
 0x93c   : > { %v1868_v7 = vadd.f32 %v2864_v0, %v1867_v5 }
 0x93e   : > { %v1872_v9 = vsel %vm1871_vm3, %v2864_v0, %v1868_v7 }
 0x93f   : > { %v1877_v10 = vsel %vm1874_vm4, %v1876_v8, %v1872_v9 }
 0x940   : > { %v1879_v11 = vmul.f32 %v1877_v10, %v1856_v57 }
 0x942   : > { %v1880_v12 = vpack.c.bf16 %v1879_v11, %v1879_v11 }
 0x944   : > { %1957 = vmatmul.bf16.vlgmr.msrb.gmra.mxu3 %v1880_v12 }
 0x9c7   : > { %v1958_v14 = vpop.f32.mrf.mxu3 }
 0x9c8   : > { %v1959_v15 = vadd.f32 %v2840_v13, %v1958_v14 }
 0x9ca   : > { %v1962_v16 = vadd.f32 %v1959_v15, %v3954_v18 }
 0x9cc   : > { %1963 = vst [vmem:[%s3820_s3] sm:$0xff] %v1962_v16 }
 0x9cd   : > { %3252 = shalt.err (!%p3249_p10)
}
 0x9ce   : > { %2676 = dma.vmem_to_hbm [thread:$0]  (%p3669_p1), %s1978_s26, 128, %s1980_s27, %s1965_s28  }
 0x9cf   : > { %v1960_v17 = vpop.f32.mrf.mxu3 }
 0x9d0 PF: > { %s4176_s23 = sld [smem:[#allocation40_spill]] }
 0x9d1   : > { %s4177_s3 = sld [smem:[#allocation33_spill]] }
 0x9d6   : > { %p2729_p5 = scmp.ge.s32.totalorder %s4176_s23, 2 }
 0x9d7   : > { %s1991_s8 = sand.u32 1, %s4177_s3  }
 0x9d8   : > { %p2717_p12 = pnand %p2729_p5, %p3680_p6  ;;  %s1992_s19 = scalar_lea.sflag [#allocation4], %s1991_s8 }
 0x9da   : > { %p2718_p2 = pneg %p2717_p12 }
 0x9dc   : > { %3326 = dma.done.wait (%p2718_p2), %s1992_s19, 128  }
 0x9dd   : > { %3328 = vsyncadd (%p2718_p2), %s1992_s19, 4294967168  ;;  %s47_s1 = sadd.s32 1, %s4176_s23   ;;  %s4179_s24 = sld [smem:[#allocation31_spill]] }
 0x9de   : > { %p44_p3 = scmp.ge.s32.totalorder %s47_s1, 6   ;;  %s4180_s25 = sld [smem:[#allocation32_spill]] }
 0x9df   : > { %s4181_s26 = sld [smem:[#allocation45_spill]] }
 0x9e0   : > { %s4182_s27 = sld [smem:[#allocation34_spill]] }
 0x9e1   : > { %s4183_s28 = sld [smem:[#allocation35_spill]] }
 0x9e2   : > { %s4184_s29 = sld [smem:[#allocation46_spill]]  ;;  %46 = sbr.rel (!%p44_p3) target bundleno = 38 (0x26), region = 253 }
 0x9e3   : > { %s4185_s0 = sld [smem:[#allocation38_spill]] }
 0x9e4   : > { %s4186_s30 = sld [smem:[#allocation39_spill]] }
 0x9e5   : > { %s4187_s18 = sld [smem:[#allocation43_spill]] }
 0x9e6   : > { %s4188_s19 = sld [smem:[#allocation44_spill]] }
 0x9e7   :  { %1998 = vsyncpa [#allocation3], 1 }
 0x9e8   :  { %2000 = vsyncpa [#allocation3 + $0x1], 1 }
 0x9e9   :  { %2001 = vsyncpa [#allocation6], 1 }
 0x9ea   :  { %2002 = vsyncpa [#allocation9], 1 }
 0x9eb   :  { %2003 = vsyncpa [#allocation12], 1 }
 0x9ec   :  { %2005 = vsyncpa [#allocation12 + $0x1], 1 }
 0x9ed   :  { %2006 = vsyncpa [#allocation15], 1 }
 0x9ee   :  { %2008 = vsyncpa [#allocation15 + $0x1], 1 }
 0x9ef   :  { %2009 = vsyncpa [#allocation18], 1 }
 0x9f0   :  { %2011 = vsyncpa [#allocation18 + $0x1], 1 }
 0x9f1   :  { %2012 = vsyncpa [#allocation21], 1 }
 0x9f2   :  { %2014 = vsyncpa [#allocation21 + $0x1], 1 }
 0x9f3   :  { %2015 = vsyncpa [#allocation4], 1 }
 0x9f4   :  { %2017 = vsyncpa [#allocation4 + $0x1], 1 }

</bundles_post_ra>
